<compile_context>
chip_gen: v5e
topology: v5e:2x2
jax: 0.10.0
libtpu: 0.0.40
codegen_flags: <defaults>
</compile_context>

<pallas_src>
import functools

import numpy as np
import jax
import jax.numpy as jnp
from jax.experimental import pallas as pl
from jax.experimental.pallas import tpu as pltpu


def _prep_kernel(D, x2_ref, ohT_ref, pp_ref, mat_ref,
                 r_ref, s_ref, l_ref, lm_ref):
    """Per-node prep: normalization, class centers, fake labels (runs once)."""
    f32 = jnp.float32
    x2 = x2_ref[...]                              # (N, 2D) = [xr | xi]
    xr = x2[:, :D]
    xi = x2[:, D:]

    # norm_features = x / (|x| + 1e-5); one reciprocal shared by real & imag planes.
    # Exact (approx=False) here because this error is amplified ~sqrt(N)x by the
    # message matmul; the cheap approx reciprocal is used on the output side instead.
    inv = pl.reciprocal(jnp.sqrt(xr * xr + xi * xi) + 1e-5, approx=False)
    nr = xr * inv
    ni = xi * inv
    r = jnp.concatenate([nr, ni], axis=1)         # (N, 2D)   [nr | ni]
    s = jnp.concatenate([-ni, nr], axis=1)        # (N, 2D)   [-ni | nr]
    r_ref[...] = r
    s_ref[...] = s

    # get_centers: per-class complex mean of norm_features, packed (C, 2D) = [mr | mi]
    ohT = ohT_ref[...]                            # (C, N)
    cnt = jnp.maximum(jnp.sum(ohT, axis=1, keepdims=True), 1.0)  # guard empty class
    rm = jnp.dot(ohT, r, preferred_element_type=f32) / cnt       # (C, 2D)

    # get_label scores, fused: pp = [p1r; p1i; p2r; p2i]  (4, D)
    pp = pp_ref[...]
    p1r, p1i = pp[0:1, :], pp[1:2, :]
    p2r, p2i = pp[2:3, :], pp[3:4, :]
    w1 = jnp.concatenate([jnp.concatenate([p1r, -p1i], axis=1),
                          jnp.concatenate([p1i,  p1r], axis=1)], axis=0)  # (2, 2D)
    w2 = jnp.concatenate([jnp.concatenate([p2r, -p2i], axis=1),
                          jnp.concatenate([p2i,  p2r], axis=1)], axis=0)  # (2, 2D)
    dn = (((1,), (1,)), ((), ()))                 # contract last dims (B^T matmul)
    f = jax.lax.dot_general(r, w1, dn, preferred_element_type=f32)   # (N, 2) [fr|fi]
    c = jax.lax.dot_general(w2, rm, dn, preferred_element_type=f32)  # (2, C) [cr;ci]
    sr = f[:, 0:1] + c[0:1, :]                    # (N, C)
    si = f[:, 1:2] + c[1:2, :]
    s2 = sr * sr + si * si                        # sqrt dropped (monotone for argmax)

    # first-argmax over classes (matches torch.max(dim=1) tie-break), kept 2-D
    n_rows, n_cls = s2.shape
    col = jax.lax.broadcasted_iota(jnp.int32, (n_rows, n_cls), 1)
    maxv = jnp.max(s2, axis=1, keepdims=True)
    sel = jnp.min(jnp.where(s2 == maxv, col, n_cls), axis=1, keepdims=True)
    lab_oh = (col == sel).astype(f32)             # (N, C) one-hot of fake label

    l_ref[...] = lab_oh
    lm_ref[...] = jnp.dot(lab_oh, mat_ref[...], preferred_element_type=f32)  # (N, C)


def _agg_kernel(D, a_ref, r_ref, s_ref, l_ref, lm_ref, out_ref):
    """Row-tiled aggregation: (TM, N) tile of A -> (TM, 2D) tile of output."""
    f32 = jnp.float32
    dn = (((1,), (1,)), ((), ()))

    # A_hat[i, j] = theta_matrix[label[i], label[j]] via one-hot sandwich
    a_hat = jax.lax.dot_general(lm_ref[...], l_ref[...], dn,
                                preferred_element_type=f32)           # (TM, N)
    a = a_ref[...]
    a2 = jnp.where(a > 0, jnp.float32(1.0), a) * a_hat
    # For a general real-valued A every entry needs its own cos/sin; only a binary
    # adjacency would let this collapse to the C^2 table lab_oh @ cos(mat) @ lab_oh^T.
    adj_r = jnp.cos(a2)
    adj_i = jnp.sin(a2)

    # Fused complex message: [m_r | m_i] = adj_r @ [nr | ni] + adj_i @ [-ni | nr]
    m = (jnp.dot(adj_r, r_ref[...], preferred_element_type=f32)
         + jnp.dot(adj_i, s_ref[...], preferred_element_type=f32))    # (TM, 2D)

    mr = m[:, :D]
    mi = m[:, D:]
    inv = pl.reciprocal(jnp.sqrt(mr * mr + mi * mi) + 1e-5, approx=True)  # (TM, D)
    out_ref[...] = m * jnp.concatenate([inv, inv], axis=1)


def angular_agg_forward(x2, A, ohT, pp, mat, *, tile_m=None):
    """x2: (N, 2D) packed [xr|xi]; A: (N, N); ohT: (C, N); pp: (4, D) packed params
    [p1r; p1i; p2r; p2i]; mat: (C, C). Returns packed (N, 2D) output [out_r | out_i]."""
    f32 = jnp.float32
    N, two_d = x2.shape
    D = two_d // 2
    C = ohT.shape[0]

    # --- pass 1: per-node prep (normalize, centers, fake labels) -------------------
    vmem = lambda: pl.BlockSpec(memory_space=pltpu.MemorySpace.VMEM)
    r, s, l, lm = pl.pallas_call(
        functools.partial(_prep_kernel, D),
        out_shape=(jax.ShapeDtypeStruct((N, 2 * D), f32),   # R  = [nr | ni]
                   jax.ShapeDtypeStruct((N, 2 * D), f32),   # S  = [-ni | nr]
                   jax.ShapeDtypeStruct((N, C), f32),       # L  = fake-label one-hot
                   jax.ShapeDtypeStruct((N, C), f32)),      # LM = L @ theta_matrix
        in_specs=[vmem() for _ in range(4)],
        out_specs=(vmem(), vmem(), vmem(), vmem()),
    )(x2, ohT, pp, mat)

    # --- pass 2: row-tiled aggregation over A --------------------------------------
    if tile_m is None:
        tile_m = min(N, 256)          # 256 keeps tiles well inside v7x's 64 MiB VMEM
    assert N % tile_m == 0, "num_nodes must be a multiple of the row tile"
    grid = (N // tile_m,)

    # VMEM budget: double-buffered A/out tiles + resident packed features + temps.
    vmem_bytes = (2 * tile_m * N * 4            # A row tile (double-buffered)
                  + 2 * (N * 2 * D * 4)         # R + S resident
                  + 2 * (N * C * 4)             # L + LM
                  + 2 * tile_m * 2 * D * 4      # output tile (double-buffered)
                  + 5 * tile_m * N * 4          # a_hat / a2 / adj_r / adj_i temps
                  + (2 << 20))
    vmem_bytes = int(min(max(vmem_bytes, 16 << 20), 48 << 20))

    out = pl.pallas_call(
        functools.partial(_agg_kernel, D),
        out_shape=jax.ShapeDtypeStruct((N, 2 * D), f32),
        grid=grid,
        in_specs=[
            pl.BlockSpec((tile_m, N), lambda i: (i, 0)),    # A row tile (pipelined)
            pl.BlockSpec((N, 2 * D), lambda i: (0, 0)),     # R resident
            pl.BlockSpec((N, 2 * D), lambda i: (0, 0)),     # S resident
            pl.BlockSpec((N, C), lambda i: (0, 0)),         # L resident
            pl.BlockSpec((tile_m, C), lambda i: (i, 0)),    # LM row tile
        ],
        out_specs=pl.BlockSpec((tile_m, 2 * D), lambda i: (i, 0)),
        compiler_params=pltpu.CompilerParams(
            dimension_semantics=("parallel",),              # v7x: shard tiles over 2 TCs
            vmem_limit_bytes=vmem_bytes),
    )(A, r, s, l, lm)
    return out


def reference(xr, xi, A, ohT, p1r, p1i, p2r, p2i, mat):
    # pure-JAX real/imag reference of the torch forward
    mod = jnp.sqrt(xr ** 2 + xi ** 2) + 1e-5
    nr, ni = xr / mod, xi / mod
    cnt = ohT.sum(axis=1, keepdims=True)
    mr = (ohT @ nr) / cnt
    mi = (ohT @ ni) / cnt
    fr = nr @ p1r[0] - ni @ p1i[0]
    fi = nr @ p1i[0] + ni @ p1r[0]
    cr = mr @ p2r[0] - mi @ p2i[0]
    ci = mr @ p2i[0] + mi @ p2r[0]
    sr = fr[:, None] + cr[None, :]
    si = fi[:, None] + ci[None, :]
    sabs = jnp.sqrt(sr ** 2 + si ** 2)
    lab = jnp.argmax(sabs, axis=1)
    a_hat = mat[lab][:, lab]
    a2 = jnp.where(A > 0, 1.0, A) * a_hat
    ar, ai = jnp.cos(a2), jnp.sin(a2)
    m_r = ar @ nr - ai @ ni
    m_i = ar @ ni + ai @ nr
    m2 = jnp.sqrt(m_r ** 2 + m_i ** 2) + 1e-5
    return m_r / m2, m_i / m2


if __name__ == "__main__":
    N, C, D = 128, 4, 32          # num_nodes, num_class, input_dim

    key = jax.random.PRNGKey(0)
    k_xr, k_xi, k_a, k_th, k_pr, k_pi, k_perm = jax.random.split(key, 7)

    # input x is complex (N, D); A is a real (N, N) adjacency-like matrix
    xr = jax.random.normal(k_xr, (N, D), jnp.float32)
    xi = jax.random.normal(k_xi, (N, D), jnp.float32)
    A = jax.random.normal(k_a, (N, N), jnp.float32)

    # labels buffer (every class present), one-hot pre-transposed to (C, N)
    labels = jax.random.permutation(k_perm, jnp.arange(N) % C)
    ohT = jax.nn.one_hot(labels, C, dtype=jnp.float32).T

    # parameters: theta (C*(C-1)/2,) and complex params (2D, 1) split into real/imag
    num = C * (C - 1) // 2
    theta = np.asarray(jax.random.normal(k_th, (num,), jnp.float32)) * np.pi
    params_r = jax.random.normal(k_pr, (2 * D,), jnp.float32)
    params_i = jax.random.normal(k_pi, (2 * D,), jnp.float32)
    p1r, p2r = params_r[:D].reshape(1, D), params_r[D:].reshape(1, D)
    p1i, p2i = params_i[:D].reshape(1, D), params_i[D:].reshape(1, D)

    # negative_symmetric_theta(), reproducing the torch indexing exactly
    # (the second assignment re-targets the upper triangle, matching the module)
    iu = np.triu_indices(C, k=1)
    il = np.tril_indices(C, k=-1)
    mat_np = np.zeros((C, C), np.float32)
    mat_np[iu[0], iu[1]] = theta
    mat_np[il[1], il[0]] = -theta
    mat = jnp.asarray(mat_np)

    # packed kernel operands: features (N, 2D) and params (4, D)
    x2 = jnp.concatenate([xr, xi], axis=1)               # [xr | xi]
    pp = jnp.concatenate([p1r, p1i, p2r, p2i], axis=0)   # [p1r; p1i; p2r; p2i]

    # mean_tensor / mag buffers of the module are either overwritten before use or
    # unused (post_norm) in forward, so they are not inputs to the kernel.
    out = angular_agg_forward(x2, A, ohT, pp, mat)
    jax.block_until_ready(out)
    out_r = np.asarray(out[:, :D])
    out_i = np.asarray(out[:, D:])

    ref_r, ref_i = reference(xr, xi, A, ohT, p1r, p1i, p2r, p2i, mat)
    assert np.max(np.abs(out_r - np.asarray(ref_r))) < 1e-2
    assert np.max(np.abs(out_i - np.asarray(ref_i))) < 1e-2

    print("KERNEL_OK")
</pallas_src>

<mosaic_0001>
module attributes {stable_mosaic.version = 11 : i64} {
  func.func @_prep_kernel(%arg0: memref<128x64xf32, #tpu.memory_space<vmem>>, %arg1: memref<4x128xf32, #tpu.memory_space<vmem>>, %arg2: memref<4x32xf32, #tpu.memory_space<vmem>>, %arg3: memref<4x4xf32, #tpu.memory_space<vmem>>, %arg4: memref<128x64xf32, #tpu.memory_space<vmem>>, %arg5: memref<128x64xf32, #tpu.memory_space<vmem>>, %arg6: memref<128x4xf32, #tpu.memory_space<vmem>>, %arg7: memref<128x4xf32, #tpu.memory_space<vmem>>) attributes {dimension_semantics = [], scalar_prefetch = 0 : i64, scratch_operands = 0 : i64, tpu.core_type = #tpu.core_type<tc>} {
    %c0 = arith.constant 0 : index
    %c0_0 = arith.constant 0 : index
    %0 = vector.load %arg0[%c0, %c0_0] : memref<128x64xf32, #tpu.memory_space<vmem>>, vector<128x64xf32>
    %1 = vector.extract_strided_slice %0 {offsets = [0, 0], sizes = [128, 32], strides = [1, 1]} : vector<128x64xf32> to vector<128x32xf32>
    %2 = vector.extract_strided_slice %0 {offsets = [0, 32], sizes = [128, 32], strides = [1, 1]} : vector<128x64xf32> to vector<128x32xf32>
    %3 = arith.mulf %1, %1 : vector<128x32xf32>
    %4 = arith.mulf %2, %2 : vector<128x32xf32>
    %5 = arith.addf %3, %4 : vector<128x32xf32>
    %6 = math.sqrt %5 : vector<128x32xf32>
    %cst = arith.constant 9.99999974E-6 : f32
    %7 = vector.broadcast %cst : f32 to vector<128x32xf32>
    %8 = arith.addf %6, %7 : vector<128x32xf32>
    %9 = tpu.reciprocal %8 : vector<128x32xf32> -> vector<128x32xf32>
    %10 = arith.mulf %1, %9 : vector<128x32xf32>
    %11 = arith.mulf %2, %9 : vector<128x32xf32>
    %12 = tpu.concatenate %10, %11 in 1 : vector<128x32xf32>, vector<128x32xf32> -> vector<128x64xf32>
    %cst_1 = arith.constant 0.000000e+00 : f32
    %13 = vector.broadcast %cst_1 : f32 to vector<128x32xf32>
    %14 = arith.subf %13, %11 : vector<128x32xf32>
    %15 = tpu.concatenate %14, %10 in 1 : vector<128x32xf32>, vector<128x32xf32> -> vector<128x64xf32>
    %c0_2 = arith.constant 0 : index
    %c0_3 = arith.constant 0 : index
    %16 = vector.load %arg4[%c0_2, %c0_3] : memref<128x64xf32, #tpu.memory_space<vmem>>, vector<128x64xf32>
    tpu.vector_store %arg4[%c0_2, %c0_3], %12 {strides = array<i32>} : memref<128x64xf32, #tpu.memory_space<vmem>>, vector<128x64xf32>,
    %c0_4 = arith.constant 0 : index
    %c0_5 = arith.constant 0 : index
    %17 = vector.load %arg5[%c0_4, %c0_5] : memref<128x64xf32, #tpu.memory_space<vmem>>, vector<128x64xf32>
    tpu.vector_store %arg5[%c0_4, %c0_5], %15 {strides = array<i32>} : memref<128x64xf32, #tpu.memory_space<vmem>>, vector<128x64xf32>,
    %c0_6 = arith.constant 0 : index
    %c0_7 = arith.constant 0 : index
    %18 = vector.load %arg1[%c0_6, %c0_7] : memref<4x128xf32, #tpu.memory_space<vmem>>, vector<4x128xf32>
    %cst_8 = arith.constant dense<0.000000e+00> : vector<4xf32>
    %19 = vector.multi_reduction <add>, %18, %cst_8 [1] : vector<4x128xf32> to vector<4xf32>
    %20 = vector.shape_cast %19 : vector<4xf32> to vector<4x1xf32>
    %cst_9 = arith.constant 1.000000e+00 : f32
    %21 = vector.broadcast %cst_9 : f32 to vector<4x1xf32>
    %22 = arith.maximumf %20, %21 : vector<4x1xf32>
    %cst_10 = arith.constant dense<0.000000e+00> : vector<4x64xf32>
    %23 = tpu.matmul %18, %12, %cst_10 {dimension_numbers = #tpu.dot_dimension_numbers<[1], [0], [0], [1], [0, 0, 1, 1], [], []>} : vector<4x128xf32>, vector<128x64xf32>, vector<4x64xf32> -> vector<4x64xf32>
    %24 = vector.broadcast %22 : vector<4x1xf32> to vector<4x64xf32>
    %25 = arith.divf %23, %24 : vector<4x64xf32>
    %c0_11 = arith.constant 0 : index
    %c0_12 = arith.constant 0 : index
    %26 = vector.load %arg2[%c0_11, %c0_12] : memref<4x32xf32, #tpu.memory_space<vmem>>, vector<4x32xf32>
    %27 = vector.extract_strided_slice %26 {offsets = [0, 0], sizes = [1, 32], strides = [1, 1]} : vector<4x32xf32> to vector<1x32xf32>
    %28 = vector.extract_strided_slice %26 {offsets = [1, 0], sizes = [1, 32], strides = [1, 1]} : vector<4x32xf32> to vector<1x32xf32>
    %29 = vector.extract_strided_slice %26 {offsets = [2, 0], sizes = [1, 32], strides = [1, 1]} : vector<4x32xf32> to vector<1x32xf32>
    %30 = vector.extract_strided_slice %26 {offsets = [3, 0], sizes = [1, 32], strides = [1, 1]} : vector<4x32xf32> to vector<1x32xf32>
    %cst_13 = arith.constant 0.000000e+00 : f32
    %31 = vector.broadcast %cst_13 : f32 to vector<1x32xf32>
    %32 = arith.subf %31, %28 : vector<1x32xf32>
    %33 = tpu.concatenate %27, %32 in 1 : vector<1x32xf32>, vector<1x32xf32> -> vector<1x64xf32>
    %34 = tpu.concatenate %28, %27 in 1 : vector<1x32xf32>, vector<1x32xf32> -> vector<1x64xf32>
    %35 = tpu.concatenate %33, %34 in 0 : vector<1x64xf32>, vector<1x64xf32> -> vector<2x64xf32>
    %cst_14 = arith.constant 0.000000e+00 : f32
    %36 = vector.broadcast %cst_14 : f32 to vector<1x32xf32>
    %37 = arith.subf %36, %30 : vector<1x32xf32>
    %38 = tpu.concatenate %29, %37 in 1 : vector<1x32xf32>, vector<1x32xf32> -> vector<1x64xf32>
    %39 = tpu.concatenate %30, %29 in 1 : vector<1x32xf32>, vector<1x32xf32> -> vector<1x64xf32>
    %40 = tpu.concatenate %38, %39 in 0 : vector<1x64xf32>, vector<1x64xf32> -> vector<2x64xf32>
    %cst_15 = arith.constant dense<0.000000e+00> : vector<128x2xf32>
    %41 = tpu.matmul %12, %35, %cst_15 {dimension_numbers = #tpu.dot_dimension_numbers<[1], [1], [0], [0], [0, 0, 1, 0], [], []>} : vector<128x64xf32>, vector<2x64xf32>, vector<128x2xf32> -> vector<128x2xf32>
    %cst_16 = arith.constant dense<0.000000e+00> : vector<2x4xf32>
    %42 = tpu.matmul %40, %25, %cst_16 {dimension_numbers = #tpu.dot_dimension_numbers<[1], [1], [0], [0], [0, 0, 1, 0], [], []>} : vector<2x64xf32>, vector<4x64xf32>, vector<2x4xf32> -> vector<2x4xf32>
    %43 = vector.extract_strided_slice %41 {offsets = [0, 0], sizes = [128, 1], strides = [1, 1]} : vector<128x2xf32> to vector<128x1xf32>
    %44 = vector.extract_strided_slice %42 {offsets = [0, 0], sizes = [1, 4], strides = [1, 1]} : vector<2x4xf32> to vector<1x4xf32>
    %45 = vector.broadcast %43 : vector<128x1xf32> to vector<128x4xf32>
    %46 = vector.broadcast %44 : vector<1x4xf32> to vector<128x4xf32>
    %47 = arith.addf %45, %46 : vector<128x4xf32>
    %48 = vector.extract_strided_slice %41 {offsets = [0, 1], sizes = [128, 1], strides = [1, 1]} : vector<128x2xf32> to vector<128x1xf32>
    %49 = vector.extract_strided_slice %42 {offsets = [1, 0], sizes = [1, 4], strides = [1, 1]} : vector<2x4xf32> to vector<1x4xf32>
    %50 = vector.broadcast %48 : vector<128x1xf32> to vector<128x4xf32>
    %51 = vector.broadcast %49 : vector<1x4xf32> to vector<128x4xf32>
    %52 = arith.addf %50, %51 : vector<128x4xf32>
    %53 = arith.mulf %47, %47 : vector<128x4xf32>
    %54 = arith.mulf %52, %52 : vector<128x4xf32>
    %55 = arith.addf %53, %54 : vector<128x4xf32>
    %56 = tpu.iota {dimensions = array<i32: 1>} : vector<128x4xi32>
    %cst_17 = arith.constant dense<0xFF800000> : vector<128xf32>
    %57 = vector.multi_reduction <maximumf>, %55, %cst_17 [1] : vector<128x4xf32> to vector<128xf32>
    %58 = vector.shape_cast %57 : vector<128xf32> to vector<128x1xf32>
    %59 = vector.broadcast %58 : vector<128x1xf32> to vector<128x4xf32>
    %60 = arith.cmpf oeq, %55, %59 : vector<128x4xf32>
    %c4_i32 = arith.constant 4 : i32
    %61 = vector.broadcast %c4_i32 : i32 to vector<128x4xi32>
    %62 = arith.select %60, %56, %61 : vector<128x4xi1>, vector<128x4xi32>
    %cst_18 = arith.constant dense<2147483647> : vector<128xi32>
    %63 = vector.multi_reduction <minsi>, %62, %cst_18 [1] : vector<128x4xi32> to vector<128xi32>
    %64 = vector.shape_cast %63 : vector<128xi32> to vector<128x1xi32>
    %65 = vector.broadcast %64 : vector<128x1xi32> to vector<128x4xi32>
    %66 = arith.cmpi eq, %56, %65 : vector<128x4xi32>
    %67 = arith.extui %66 : vector<128x4xi1> to vector<128x4xi32>
    %68 = arith.sitofp %67 : vector<128x4xi32> to vector<128x4xf32>
    %c0_19 = arith.constant 0 : index
    %c0_20 = arith.constant 0 : index
    %69 = vector.load %arg6[%c0_19, %c0_20] : memref<128x4xf32, #tpu.memory_space<vmem>>, vector<128x4xf32>
    tpu.vector_store %arg6[%c0_19, %c0_20], %68 {strides = array<i32>} : memref<128x4xf32, #tpu.memory_space<vmem>>, vector<128x4xf32>,
    %c0_21 = arith.constant 0 : index
    %c0_22 = arith.constant 0 : index
    %70 = vector.load %arg3[%c0_21, %c0_22] : memref<4x4xf32, #tpu.memory_space<vmem>>, vector<4x4xf32>
    %cst_23 = arith.constant dense<0.000000e+00> : vector<128x4xf32>
    %71 = tpu.matmul %68, %70, %cst_23 {dimension_numbers = #tpu.dot_dimension_numbers<[1], [0], [0], [1], [0, 0, 1, 1], [], []>} : vector<128x4xf32>, vector<4x4xf32>, vector<128x4xf32> -> vector<128x4xf32>
    %c0_24 = arith.constant 0 : index
    %c0_25 = arith.constant 0 : index
    %72 = vector.load %arg7[%c0_24, %c0_25] : memref<128x4xf32, #tpu.memory_space<vmem>>, vector<128x4xf32>
    tpu.vector_store %arg7[%c0_24, %c0_25], %71 {strides = array<i32>} : memref<128x4xf32, #tpu.memory_space<vmem>>, vector<128x4xf32>,
    return
  }
}

</mosaic_0001>

<bundles_post_ra>
// kernel: tpu_custom_call.1
= control target key start
LH: loop header
LB: loop body
LE: loop exit
PB: predicated region body
PF: predicated region fallthrough
CT: control target
= control target key end

     0   :  { %s2000_s30 = smov 96   ;;  %s2001_s12 = smov 32   ;;  %s3672_s0 = inlined_call_operand.vmem [shape: f32[128,64], index: 0, kind: input, shape index: {}]   ;;  %s3673_s2 = inlined_call_operand.vmem [shape: f32[4,32], index: 2, kind: input, shape index: {}]   ;;  %s3674_s1 = inlined_call_operand.vmem [shape: f32[4,128], index: 1, kind: input, shape index: {}]   ;;  %s3675_s4 = inlined_call_operand.vmem [shape: f32[128,64], index: 4, kind: output, shape index: {0}]   ;;  %s3676_s5 = inlined_call_operand.vmem [shape: f32[128,64], index: 5, kind: output, shape index: {1}]   ;;  %s3677_s3 = inlined_call_operand.vmem [shape: f32[4,4], index: 3, kind: input, shape index: {}]   ;;  %s3678_s6 = inlined_call_operand.vmem [shape: f32[128,4], index: 6, kind: output, shape index: {2}]   ;;  %s3679_s7 = inlined_call_operand.vmem [shape: f32[128,4], index: 7, kind: output, shape index: {3}]  }
   0x1   :  { %v36_v0 = vld [vmem:[%s3672_s0 + $0x78] sm:$0xff]  ;;  %v34_v1 = vld [vmem:[%s3672_s0 + $0x68] sm:$0xff]  ;;  %v35_v6 = vld [vmem:[%s3672_s0 + $0x70] sm:$0xff] }
   0x2   :  { %v32_v2 = vld [vmem:[%s3672_s0 + $0x58] sm:$0xff]  ;;  %v2054_v3 = vmul.f32 %v36_v0, %v36_v0  ;;  %v2056_v4 = vmul.f32 %v34_v1, %v34_v1  ;;  %v33_v7 = vld [vmem:[%s3672_s0 + $0x60] sm:$0xff]  ;;  %v31_v8 = vld [vmem:[%s3672_s0 + $0x50] sm:$0xff]  ;;  %v2072_v9 = vmul.f32 %v35_v6, %v35_v6 }
   0x3   :  { %v48_v5 = vmul.f32 %v32_v2, %v32_v2  ;;  %v2074_v10 = vmul.f32 %v33_v7, %v33_v7  ;;  %v47_v11 = vmul.f32 %v31_v8, %v31_v8  ;;  %v30_v12 = vld [vmem:[%s3672_s0 + $0x48] sm:$0xff]  ;;  %v29_v13 = vld [vmem:[%s3672_s0 + $0x40] sm:$0xff]  ;;  %v28_v14 = vld [vmem:[%s3672_s0 + $0x38] sm:$0xff] }
   0x4   :  { %99 = vrot.lane.b32.xlu0 %v2054_v3, %s2000_s30  ;;  %95 = vrot.lane.b32.xlu1 %v2056_v4, %s2000_s30  ;;  %v2090_v15 = vmul.f32 %v30_v12, %v30_v12  ;;  %v2092_v16 = vmul.f32 %v29_v13, %v29_v13  ;;  %v44_v17 = vmul.f32 %v28_v14, %v28_v14  ;;  %v27_v18 = vld [vmem:[%s3672_s0 + $0x30] sm:$0xff]  ;;  %v26_v19 = vld [vmem:[%s3672_s0 + $0x28] sm:$0xff] }
   0x5   :  { %91 = vrot.lane.b32.xlu2 %v48_v5, %s2000_s30  ;;  %v25_v20 = vld [vmem:[%s3672_s0 + $0x20] sm:$0xff]  ;;  %v2108_v21 = vmul.f32 %v27_v18, %v27_v18  ;;  %v2110_v22 = vmul.f32 %v26_v19, %v26_v19  ;;  %v24_v24 = vld [vmem:[%s3672_s0 + $0x18] sm:$0xff]  ;;  %v23_v25 = vld [vmem:[%s3672_s0 + $0x10] sm:$0xff] }
   0x6   :  { %v41_v23 = vmul.f32 %v25_v20, %v25_v20  ;;  %v22_v26 = vld [vmem:[%s3672_s0 + $0x8] sm:$0xff]  ;;  %v2126_v27 = vmul.f32 %v24_v24, %v24_v24  ;;  %v2128_v28 = vmul.f32 %v23_v25, %v23_v25  ;;  %v21_v30 = vld [vmem:[%s3672_s0] sm:$0xff] }
   0x7   :  { %v2130_v29 = vmul.f32 %v22_v26, %v22_v26  ;;  %v2141_v31 = vmul.f32 %v21_v30, %v21_v30 }
   0xc   :  { %97 = vrot.lane.b32.xlu0 %v2072_v9, %s2000_s30  ;;  %93 = vrot.lane.b32.xlu1 %v2074_v10, %s2000_s30 }
   0xd   :  { %89 = vrot.lane.b32.xlu2 %v47_v11, %s2000_s30 }
  0x14   :  { %87 = vrot.lane.b32.xlu0 %v2090_v15, %s2000_s30  ;;  %85 = vrot.lane.b32.xlu1 %v2092_v16, %s2000_s30 }
  0x15   :  { %83 = vrot.lane.b32.xlu2 %v44_v17, %s2000_s30 }
  0x1c   :  { %81 = vrot.lane.b32.xlu0 %v2108_v21, %s2000_s30  ;;  %79 = vrot.lane.b32.xlu1 %v2110_v22, %s2000_s30 }
  0x1d   :  { %77 = vrot.lane.b32.xlu2 %v41_v23, %s2000_s30 }
  0x24   :  { %75 = vrot.lane.b32.xlu0 %v2126_v27, %s2000_s30  ;;  %73 = vrot.lane.b32.xlu1 %v2128_v28, %s2000_s30 }
  0x25   :  { %71 = vrot.lane.b32.xlu2 %v2130_v29, %s2000_s30 }
  0x2c   :  { %69 = vrot.lane.b32.xlu0 %v2141_v31, %s2000_s30 }
  0x5f   :  { %v92_v32 = vpop.permute.xlu2 %91 }
  0x60   :  { %v128_v33 = vadd.f32 %v92_v32, %v48_v5 }
  0x62   :  { %1918 = vrsqrt.f32 %v128_v33  ;;  %vm272_vm0 = vcmp.eq.f32.partialorder %v128_v33, inf  ;;  %v275_v57 = vand.u32 2147483648, %v128_v33  ;;  %vm274_vm1 = vcmp.eq.f32.partialorder %v128_v33, 0.0 }
  0x67   :  { %v90_v34 = vpop.permute.xlu2 %89 }
  0x68   :  { %v1919_v35 = vpop.eup %1918  ;;  %v127_v36 = vadd.f32 %v90_v34, %v47_v11 }
  0x69   :  { %v266_v37 = vmul.f32 %v1919_v35, %v128_v33 }
  0x6a   :  { %1920 = vrsqrt.f32 %v127_v36  ;;  %vm260_vm2 = vcmp.eq.f32.partialorder %v127_v36, inf  ;;  %v263_v7 = vand.u32 2147483648, %v127_v36  ;;  %vm262_vm3 = vcmp.eq.f32.partialorder %v127_v36, 0.0 }
  0x6b   :  { %v267_v38 = vmul.f32 %v1919_v35, %v266_v37 }
  0x6d   :  { %v268_v39 = vmul.f32 0.5, %v267_v38 }
  0x6f   :  { %v84_v40 = vpop.permute.xlu2 %83  ;;  %v269_v43 = vsub.f32 1.5, %v268_v39 }
  0x70   :  { %v1921_v41 = vpop.eup %1920  ;;  %v2151_v53 = vadd.f32 %v84_v40, %v44_v17 }
  0x71   :  { %v254_v42 = vmul.f32 %v1921_v41, %v127_v36  ;;  %v270_v46 = vmul.f32 %v1919_v35, %v269_v43 }
  0x73   :  { %v255_v44 = vmul.f32 %v1921_v41, %v254_v42  ;;  %v271_v54 = vmul.f32 %v270_v46, %v128_v33 }
  0x75   :  { %v256_v45 = vmul.f32 0.5, %v255_v44  ;;  %v273_v58 = vsel %vm272_vm0, %v128_v33, %v271_v54 }
  0x76   :  { %v100_v47 = vpop.permute.xlu0 %99  ;;  %v96_v48 = vpop.permute.xlu1 %95 }
  0x77   :  { %v2146_v49 = vadd.f32 %v100_v47, %v2054_v3  ;;  %v2149_v50 = vadd.f32 %v96_v48, %v2056_v4  ;;  %v78_v51 = vpop.permute.xlu2 %77  ;;  %v257_v52 = vsub.f32 1.5, %v256_v45  ;;  %v276_v3 = vsel %vm274_vm1, %v275_v57, %v273_v58 }
  0x78   :  { %v2155_v56 = vadd.f32 %v78_v51, %v41_v23  ;;  %v2171_v11 = vadd.f32 1e-05, %v276_v3 }
  0x79   :  { %1922 = vrsqrt.f32 %v2146_v49  ;;  %v258_v55 = vmul.f32 %v1921_v41, %v257_v52  ;;  %vm320_vm4 = vcmp.eq.f32.partialorder %v2146_v49, inf  ;;  %vm322_vm5 = vcmp.eq.f32.partialorder %v2146_v49, 0.0 }
  0x7a   :  { %1924 = vrsqrt.f32 %v2149_v50  ;;  %v323_v39 = vand.u32 2147483648, %v2146_v49  ;;  %vm296_vm6 = vcmp.eq.f32.partialorder %v2149_v50, inf  ;;  %vm298_vm7 = vcmp.eq.f32.partialorder %v2149_v50, 0.0 }
  0x7b   :  { %1926 = vrsqrt.f32 %v2151_v53  ;;  %v259_v0 = vmul.f32 %v258_v55, %v127_v36  ;;  %v299_v44 = vand.u32 2147483648, %v2149_v50 }
  0x7c   :  { %1928 = vrsqrt.f32 %v2155_v56 }
  0x7e   :  { %v98_v59 = vpop.permute.xlu0 %97  ;;  %v94_v60 = vpop.permute.xlu1 %93 }
  0x7f   :  { %v1923_v61 = vpop.eup %1922  ;;  %v2159_v62 = vadd.f32 %v98_v59, %v2072_v9  ;;  %v2162_v63 = vadd.f32 %v94_v60, %v2074_v10  ;;  %v72_v5 = vpop.permute.xlu2 %71  ;;  %v261_v10 = vsel %vm260_vm2, %v127_v36, %v259_v0 }
  0x80   :  { %v1925_v1 = vpop.eup %1924  ;;  %v314_v2 = vmul.f32 %v1923_v61, %v2146_v49  ;;  %v2174_v13 = vadd.f32 %v72_v5, %v2130_v29  ;;  %v264_v24 = vsel %vm262_vm3, %v263_v7, %v261_v10  ;;  %v504_v10 = vand.u32 2147483647, %v2171_v11 }
  0x81   :  { %v290_v4 = vmul.f32 %v1925_v1, %v2149_v50  ;;  %1930 = vrsqrt.f32 %v2159_v62  ;;  %v2169_v8 = vpop.eup %1926  ;;  %v2193_v36 = vadd.f32 1e-05, %v264_v24  ;;  %vm284_vm8 = vcmp.eq.f32.partialorder %v2162_v63, inf }
  0x82   :  { %v315_v6 = vmul.f32 %v1923_v61, %v314_v2  ;;  %1932 = vrsqrt.f32 %v2162_v63  ;;  %v2176_v17 = vpop.eup %1928  ;;  %v218_v18 = vmul.f32 %v2169_v8, %v2151_v53  ;;  %vm286_vm9 = vcmp.eq.f32.partialorder %v2162_v63, 0.0 }
  0x83   :  { %v291_v9 = vmul.f32 %v1925_v1, %v290_v4  ;;  %1934 = vrcp.f32 %v2171_v11  ;;  %v182_v40 = vmul.f32 %v2176_v17, %v2155_v56  ;;  %v492_v3 = vand.u32 2147483648, %v2193_v36 }
  0x84   :  { %v316_v12 = vmul.f32 0.5, %v315_v6  ;;  %1936 = vrsqrt.f32 %v2174_v13  ;;  %v2216_v52 = vmul.f32 %v2169_v8, %v218_v18  ;;  %v287_v6 = vand.u32 2147483648, %v2162_v63 }
  0x85   :  { %v292_v14 = vmul.f32 0.5, %v291_v9  ;;  %v183_v60 = vmul.f32 %v2176_v17, %v182_v40  ;;  %vm308_vm10 = vcmp.eq.f32.partialorder %v2159_v62, inf  ;;  %vm310_vm11 = vcmp.eq.f32.partialorder %v2159_v62, 0.0 }
  0x86   :  { %v88_v19 = vpop.permute.xlu0 %87  ;;  %v86_v20 = vpop.permute.xlu1 %85  ;;  %v317_v23 = vsub.f32 1.5, %v316_v12  ;;  %v490_v18 = vand.u32 2147483647, %v2193_v36  ;;  %v2264_v24 = vor.u32 1.1754944e-38, %v492_v3  ;;  %vm486_vm0 = vweird.f32 %v2193_v36 }
  0x87   :  { %v1931_v25 = vpop.eup %1930  ;;  %v2182_v26 = vadd.f32 %v88_v19, %v2090_v15  ;;  %v293_v29 = vsub.f32 1.5, %v292_v14  ;;  %v2189_v33 = vadd.f32 %v86_v20, %v2092_v16  ;;  %v2251_v9 = vmul.f32 0.5, %v183_v60 }
  0x88   :  { %v1933_v30 = vpop.eup %1932  ;;  %v302_v32 = vmul.f32 %v1931_v25, %v2159_v62  ;;  %v318_v34 = vmul.f32 %v1923_v61, %v317_v23 }
  0x89   :  { %v278_v35 = vmul.f32 %v1933_v30, %v2162_v63  ;;  %1938 = vrsqrt.f32 %v2182_v26  ;;  %v294_v15 = vmul.f32 %v1925_v1, %v293_v29  ;;  %v2207_v45 = vpop.eup %1934  ;;  %vm248_vm2 = vcmp.eq.f32.partialorder %v2182_v26, inf }
  0x8a   :  { %v303_v37 = vmul.f32 %v1931_v25, %v302_v32  ;;  %v319_v38 = vmul.f32 %v318_v34, %v2146_v49  ;;  %1940 = vrsqrt.f32 %v2189_v33  ;;  %v2213_v51 = vpop.eup %1936  ;;  %v2233_v1 = vmul.f32 %v2207_v45, %v2171_v11 }
  0x8b   :  { %v279_v16 = vmul.f32 %v1933_v30, %v278_v35  ;;  %v295_v41 = vmul.f32 %v294_v15, %v2149_v50  ;;  %1942 = vrcp.f32 %v2193_v36  ;;  %v146_v2 = vmul.f32 %v2213_v51, %v2174_v13 }
  0x8c   :  { %v304_v42 = vmul.f32 0.5, %v303_v37  ;;  %v321_v43 = vsel %vm320_vm4, %v2146_v49, %v319_v38  ;;  %v497_v19 = vsub.f32 1.0, %v2233_v1 }
  0x8d   :  { %v280_v46 = vmul.f32 0.5, %v279_v16  ;;  %v324_v47 = vsel %vm322_vm5, %v323_v39, %v321_v43  ;;  %v297_v48 = vsel %vm296_vm6, %v2149_v50, %v295_v41  ;;  %v2259_v20 = vmul.f32 %v2213_v51, %v146_v2 }
  0x8e   :  { %v82_v54 = vpop.permute.xlu0 %81  ;;  %v80_v55 = vpop.permute.xlu1 %79  ;;  %v2218_v57 = vadd.f32 1e-05, %v324_v47  ;;  %v300_v58 = vsel %vm298_vm7, %v299_v44, %v297_v48  ;;  %v305_v0 = vsub.f32 1.5, %v304_v42  ;;  %vm250_vm6 = vcmp.eq.f32.partialorder %v2182_v26, 0.0 }
  0x8f   :  { %v2220_v59 = vpop.eup %1938  ;;  %v2224_v49 = vadd.f32 %v82_v54, %v2108_v21  ;;  %v2226_v50 = vadd.f32 1e-05, %v300_v58  ;;  %v281_v61 = vsub.f32 1.5, %v280_v46  ;;  %v2239_v21 = vadd.f32 %v80_v55, %v2110_v22 }
  0x90   :  { %1944 = vrcp.f32 %v2218_v57  ;;  %v2242_v4 = vpop.eup %1940  ;;  %v242_v5 = vmul.f32 %v2220_v59, %v2182_v26  ;;  %v311_v22 = vand.u32 2147483648, %v2159_v62  ;;  %v306_v14 = vmul.f32 %v1931_v25, %v305_v0 }
  0x91   :  { %1946 = vrsqrt.f32 %v2224_v49  ;;  %v2249_v7 = vpop.eup %1942  ;;  %v282_v12 = vmul.f32 %v1933_v30, %v281_v61  ;;  %v230_v23 = vmul.f32 %v2242_v4, %v2189_v33  ;;  %vm556_vm12 = vweird.f32 %v2218_v57 }
  0x92   :  { %1948 = vrcp.f32 %v2226_v50  ;;  %v243_v32 = vmul.f32 %v2220_v59, %v242_v5  ;;  %v307_v35 = vmul.f32 %v306_v14, %v2159_v62  ;;  %v482_v15 = vmul.f32 %v2249_v7, %v2193_v36 }
  0x93   :  { %1950 = vrsqrt.f32 %v2239_v21  ;;  %v283_v25 = vmul.f32 %v282_v12, %v2162_v63  ;;  %v560_v40 = vand.u32 2147483647, %v2218_v57  ;;  %v562_v41 = vand.u32 2147483648, %v2218_v57 }
  0x94   :  { %v231_v44 = vmul.f32 %v2242_v4, %v230_v23  ;;  %v532_v47 = vand.u32 2147483647, %v2226_v50  ;;  %v244_v48 = vmul.f32 0.5, %v243_v32  ;;  %v483_v3 = vsub.f32 1.0, %v482_v15 }
  0x95   :  { %v285_v42 = vsel %vm284_vm8, %v2162_v63, %v283_v25  ;;  %v534_v12 = vand.u32 2147483648, %v2226_v50  ;;  %vm561_vm1 = vcmp.eq.f32.partialorder %v560_v40, 8.507059e+37  ;;  %vm528_vm3 = vweird.f32 %v2226_v50 }
  0x96   :  { %v1945_v29 = vpop.eup %1944  ;;  %v76_v34 = vpop.permute.xlu0 %75  ;;  %v245_v32 = vsub.f32 1.5, %v244_v48  ;;  %v2323_v15 = vmul.f32 0.5, %v231_v44  ;;  %vm533_vm5 = vcmp.eq.f32.partialorder %v532_v47, 8.507059e+37  ;;  %vm487_vm7 = vweird.f32 %v2249_v7 }
  0x97   :  { %v74_v30 = vpop.permute.xlu1 %73  ;;  %v2271_v37 = vpop.eup %1946  ;;  %v2274_v38 = vadd.f32 %v76_v34, %v2126_v27  ;;  %v552_v39 = vmul.f32 %v1945_v29, %v2218_v57  ;;  %v309_v27 = vsel %vm308_vm10, %v2159_v62, %v307_v35  ;;  %vm557_vm13 = vweird.f32 %v1945_v29 }
  0x98   :  { %v2280_v16 = vadd.f32 %v74_v30, %v2128_v28  ;;  %v1949_v43 = vpop.eup %1948  ;;  %v288_v28 = vsel %vm286_vm9, %v287_v6, %v285_v42  ;;  %v206_v54 = vmul.f32 %v2271_v37, %v2224_v49  ;;  %v312_v0 = vsel %vm310_vm11, %v311_v22, %v309_v27  ;;  %vm558_vm14 = vmor %vm556_vm12, %vm557_vm13 }
  0x99   :  { %v553_v46 = vsub.f32 1.0, %v552_v39  ;;  %v524_v55 = vmul.f32 %v1949_v43, %v2226_v50  ;;  %v2296_v58 = vpop.eup %1950  ;;  %1952 = vrsqrt.f32 %v2274_v38  ;;  %v2299_v61 = vadd.f32 1e-05, %v288_v28  ;;  %vm2374_vm13 = vmor %vm486_vm0, %vm487_vm7 }
  0x9a   :  { %1954 = vrsqrt.f32 %v2280_v16  ;;  %v2304_v2 = vadd.f32 1e-05, %v312_v0  ;;  %v563_v6 = vor.u32 1.1754944e-38, %v562_v41  ;;  %v194_v14 = vmul.f32 %v2296_v58, %v2239_v21 }
  0x9b   :  { %v554_v60 = vmul.f32 %v1945_v29, %v553_v46  ;;  %v525_v63 = vsub.f32 1.0, %v524_v55  ;;  %1956 = vrcp.f32 %v2299_v61  ;;  %vm529_vm15 = vweird.f32 %v1949_v43 }
  0x9c   :  { %1958 = vrcp.f32 %v2304_v2  ;;  %v207_v22 = vmul.f32 %v2271_v37, %v206_v54  ;;  %v484_v57 = vmul.f32 %v2249_v7, %v483_v3  ;;  %vm530_vm4 = vmor %vm528_vm3, %vm529_vm15  ;;  %v195_v50 = vmul.f32 %v2296_v58, %v194_v14 }
  0x9d   :  { %v555_v5 = vadd.f32 %v1945_v29, %v554_v60  ;;  %v526_v62 = vmul.f32 %v1949_v43, %v525_v63  ;;  %vm2335_vm8 = vcmp.eq.f32.partialorder %v490_v18, 8.507059e+37  ;;  %v251_v42 = vand.u32 2147483648, %v2182_v26 }
  0x9e   :  { %v70_v34 = vpop.permute.xlu0 %69  ;;  %vm501_vm9 = vweird.f32 %v2207_v45  ;;  %v2341_v44 = vmul.f32 0.5, %v207_v22  ;;  %vm514_vm10 = vweird.f32 %v2299_v61  ;;  %v518_v48 = vand.u32 2147483647, %v2299_v61 }
  0x9f   :  { %v559_v23 = vsel %vm558_vm14, %v1945_v29, %v555_v5  ;;  %v527_v25 = vadd.f32 %v1949_v43, %v526_v62  ;;  %v2321_v35 = vpop.eup %1952  ;;  %v535_v29 = vor.u32 1.1754944e-38, %v534_v12  ;;  %v2344_v46 = vadd.f32 %v70_v34, %v2141_v31 }
  0xa0   :  { %v2317_v30 = vsel %vm561_vm1, %v563_v6, %v559_v23  ;;  %v2329_v39 = vpop.eup %1954  ;;  %v485_v54 = vadd.f32 %v2249_v7, %v484_v57  ;;  %vm500_vm11 = vweird.f32 %v2171_v11  ;;  %v520_v31 = vand.u32 2147483648, %v2299_v61 }
  0xa1   :  { %627 = vrot.lane.b32.xlu1 %v2317_v30, %s2001_s12  ;;  %v531_v40 = vsel %vm530_vm4, %v1949_v43, %v527_v25  ;;  %v1957_v27 = vpop.eup %1956  ;;  %v246_v43 = vmul.f32 %v2220_v59, %v245_v32  ;;  %vm542_vm12 = vweird.f32 %v2304_v2  ;;  %v546_v59 = vand.u32 2147483647, %v2304_v2  ;;  %vm2412_vm4 = vmor %vm500_vm11, %vm501_vm9 }
  0xa2   :  { %v2346_v47 = vsel %vm533_vm5, %v535_v29, %v531_v40  ;;  %v1959_v28 = vpop.eup %1958  ;;  %v510_v18 = vmul.f32 %v1957_v27, %v2299_v61  ;;  %v170_v60 = vmul.f32 %v2321_v35, %v2274_v38  ;;  %v498_v3 = vmul.f32 %v2207_v45, %v497_v19 }
  0xa3   :  { %623 = vrot.lane.b32.xlu0 %v2346_v47, %s2001_s12  ;;  %v538_v55 = vmul.f32 %v1959_v28, %v2304_v2  ;;  %v247_v63 = vmul.f32 %v246_v43, %v2182_v26  ;;  %v158_v5 = vmul.f32 %v2329_v39, %v2280_v16  ;;  %1960 = vrsqrt.f32 %v2344_v46 }
  0xa4   :  { %v511_v0 = vsub.f32 1.0, %v510_v18  ;;  %v548_v12 = vand.u32 2147483648, %v2304_v2  ;;  %vm515_vm14 = vweird.f32 %v1957_v27  ;;  %v489_v1 = vsel %vm2374_vm13, %v2249_v7, %v485_v54 }
  0xa5   :  { %v539_v6 = vsub.f32 1.0, %v538_v55  ;;  %v249_v19 = vsel %vm248_vm2, %v2182_v26, %v247_v63  ;;  %vm543_vm15 = vweird.f32 %v1959_v28  ;;  %v220_v36 = vmul.f32 0.5, %v2216_v52  ;;  %vm516_vm0 = vmor %vm514_vm10, %vm515_vm14 }
  0xa6   :  { %v512_v62 = vmul.f32 %v1957_v27, %v511_v0  ;;  %v252_v23 = vsel %vm250_vm6, %v251_v42, %v249_v19  ;;  %v521_v34 = vor.u32 1.1754944e-38, %v520_v31  ;;  %v499_v57 = vadd.f32 %v2207_v45, %v498_v3  ;;  %vm544_vm2 = vmor %vm542_vm12, %vm543_vm15 }
  0xa7   :  { %v540_v22 = vmul.f32 %v1959_v28, %v539_v6  ;;  %v2387_v25 = vadd.f32 1e-05, %v252_v23  ;;  %v2395_v29 = vsel %vm2335_vm8, %v2264_v24, %v489_v1  ;;  %v506_v26 = vand.u32 2147483648, %v2171_v11 }
  0xa8   :  { %v513_v32 = vadd.f32 %v1957_v27, %v512_v62  ;;  %v221_v40 = vsub.f32 1.5, %v220_v36  ;;  %vm519_vm1 = vcmp.eq.f32.partialorder %v518_v48, 8.507059e+37  ;;  %v549_v52 = vor.u32 1.1754944e-38, %v548_v12 }
  0xa9   :  { %v541_v7 = vadd.f32 %v1959_v28, %v540_v22  ;;  %1962 = vrcp.f32 %v2387_v25  ;;  %v2403_v61 = vpop.eup %1960  ;;  %v171_v41 = vmul.f32 %v2321_v35, %v170_v60  ;;  %vm547_vm3 = vcmp.eq.f32.partialorder %v546_v59, 8.507059e+37 }
  0xaa   :  { %v517_v42 = vsel %vm516_vm0, %v1957_v27, %v513_v32  ;;  %v2416_v27 = vmul.f32 0.5, %v195_v50  ;;  %v222_v48 = vmul.f32 %v2169_v8, %v221_v40  ;;  %v159_v54 = vmul.f32 %v2329_v39, %v158_v5 }
  0xab   :  { %617 = vrot.lane.b32.xlu0 %v2395_v29, %s2001_s12  ;;  %v2406_v24 = vsel %vm519_vm1, %v521_v34, %v517_v42  ;;  %v545_v43 = vsel %vm544_vm2, %v1959_v28, %v541_v7  ;;  %v503_v28 = vsel %vm2412_vm4, %v2207_v45, %v499_v57  ;;  %vm505_vm5 = vcmp.eq.f32.partialorder %v504_v10, 8.507059e+37 }
  0xac   :  { %621 = vrot.lane.b32.xlu1 %v2406_v24, %s2001_s12  ;;  %v2420_v18 = vsel %vm547_vm3, %v549_v52, %v545_v43  ;;  %v507_v50 = vor.u32 1.1754944e-38, %v506_v26  ;;  %vm224_vm6 = vcmp.eq.f32.partialorder %v2151_v53, inf  ;;  %v223_v31 = vmul.f32 %v222_v48, %v2151_v53 }
  0xad   :  { %625 = vrot.lane.b32.xlu2 %v2420_v18, %s2001_s12  ;;  %vm226_vm7 = vcmp.eq.f32.partialorder %v2151_v53, 0.0  ;;  %v227_v55 = vand.u32 2147483648, %v2151_v53  ;;  %v209_v45 = vsub.f32 1.5, %v2341_v44  ;;  %v2436_v8 = vmul.f32 0.5, %v171_v41 }
  0xae   :  { %v134_v59 = vmul.f32 %v2403_v61, %v2344_v46  ;;  %v2440_v60 = vsel %vm505_vm5, %v507_v50, %v503_v28  ;;  %v233_v11 = vsub.f32 1.5, %v2323_v15  ;;  %v476_v0 = vand.u32 2147483647, %v2387_v25 }
  0xaf   :  { %v1963_v10 = vpop.eup %1962  ;;  %v478_v63 = vand.u32 2147483648, %v2387_v25  ;;  %v225_v3 = vsel %vm224_vm6, %v2151_v53, %v223_v31  ;;  %v210_v5 = vmul.f32 %v2271_v37, %v209_v45  ;;  %vm236_vm8 = vcmp.eq.f32.partialorder %v2189_v33, inf }
  0xb0   :  { %v468_v44 = vmul.f32 %v1963_v10, %v2387_v25  ;;  %v228_v6 = vsel %vm226_vm7, %v227_v55, %v225_v3  ;;  %v234_v12 = vmul.f32 %v2242_v4, %v233_v11  ;;  %v239_v62 = vand.u32 2147483648, %v2189_v33 }
  0xb1   :  { %v2450_v14 = vadd.f32 1e-05, %v228_v6  ;;  %v211_v15 = vmul.f32 %v210_v5, %v2224_v49  ;;  %v185_v1 = vsub.f32 1.5, %v2251_v9  ;;  %vm212_vm9 = vcmp.eq.f32.partialorder %v2224_v49, inf }
  0xb2   :  { %v469_v19 = vsub.f32 1.0, %v468_v44  ;;  %v235_v53 = vmul.f32 %v234_v12, %v2189_v33  ;;  %vm238_vm10 = vcmp.eq.f32.partialorder %v2189_v33, 0.0  ;;  %vm473_vm11 = vweird.f32 %v1963_v10 }
  0xb3   :  { %1964 = vrcp.f32 %v2450_v14  ;;  %vm214_vm12 = vcmp.eq.f32.partialorder %v2224_v49, 0.0  ;;  %v215_v4 = vand.u32 2147483648, %v2224_v49  ;;  %v213_v9 = vsel %vm212_vm9, %v2224_v49, %v211_v15 }
  0xb4   :  { %v470_v37 = vmul.f32 %v1963_v10, %v469_v19  ;;  %v237_v22 = vsel %vm236_vm8, %v2189_v33, %v235_v53  ;;  %v186_v23 = vmul.f32 %v2176_v17, %v185_v1  ;;  %vm472_vm13 = vweird.f32 %v2387_v25 }
  0xb5   :  { %619 = vrot.lane.b32.xlu2 %v2440_v60, %s2001_s12  ;;  %vm2469_vm14 = vcmp.eq.f32.partialorder %v476_v0, 8.507059e+37  ;;  %v216_v32 = vsel %vm214_vm12, %v215_v4, %v213_v9  ;;  %v240_v34 = vsel %vm238_vm10, %v239_v62, %v237_v22  ;;  %v479_v7 = vor.u32 1.1754944e-38, %v478_v63  ;;  %vm474_vm15 = vmor %vm472_vm13, %vm473_vm11 }
  0xb6   :  { %v471_v57 = vadd.f32 %v1963_v10, %v470_v37  ;;  %v2473_v26 = vadd.f32 1e-05, %v216_v32  ;;  %v2475_v40 = vadd.f32 1e-05, %v240_v34  ;;  %v448_v33 = vand.u32 2147483647, %v2450_v14 }
  0xb7   :  { %v450_v17 = vand.u32 2147483648, %v2450_v14  ;;  %v187_v49 = vmul.f32 %v186_v23, %v2155_v56  ;;  %vm188_vm0 = vcmp.eq.f32.partialorder %v2155_v56, inf  ;;  %v191_v42 = vand.u32 2147483648, %v2155_v56 }
  0xb8   :  { %v475_v25 = vsel %vm474_vm15, %v1963_v10, %v471_v57  ;;  %1966 = vrcp.f32 %v2473_v26  ;;  %v173_v52 = vsub.f32 1.5, %v2436_v8  ;;  %v2486_v43 = vmul.f32 0.5, %v2259_v20 }
  0xb9   :  { %v1965_v41 = vpop.eup %1964  ;;  %v2490_v2 = vsel %vm2469_vm14, %v479_v7, %v475_v25  ;;  %1968 = vrcp.f32 %v2475_v40  ;;  %vm190_vm1 = vcmp.eq.f32.partialorder %v2155_v56, 0.0  ;;  %v2494_v28 = vmul.f32 0.5, %v159_v54 }
  0xba   :  { %v2497_v48 = vmul.f32 %v2403_v61, %v134_v59  ;;  %615 = vrot.lane.b32.xlu1 %v2490_v2, %s2001_s12  ;;  %v440_v50 = vmul.f32 %v1965_v41, %v2450_v14  ;;  %vm444_vm2 = vweird.f32 %v2450_v14  ;;  %vm2503_vm3 = vcmp.eq.f32.partialorder %v448_v33, 8.507059e+37 }
  0xbb   :  { %v451_v31 = vor.u32 1.1754944e-38, %v450_v17  ;;  %v189_v54 = vsel %vm188_vm0, %v2155_v56, %v187_v49  ;;  %vm176_vm4 = vcmp.eq.f32.partialorder %v2274_v38, inf  ;;  %v174_v8 = vmul.f32 %v2321_v35, %v173_v52 }
  0xbc   :  { %v441_v55 = vsub.f32 1.0, %v440_v50  ;;  %v192_v45 = vsel %vm190_vm1, %v191_v42, %v189_v54  ;;  %v197_v59 = vsub.f32 1.5, %v2416_v27  ;;  %vm430_vm5 = vweird.f32 %v2473_v26 }
  0xbd   :  { %v2514_v11 = vadd.f32 1e-05, %v192_v45  ;;  %vm178_vm6 = vcmp.eq.f32.partialorder %v2274_v38, 0.0  ;;  %v179_v10 = vand.u32 2147483648, %v2274_v38  ;;  %vm445_vm7 = vweird.f32 %v1965_v41 }
  0xbe   :  { %v1967_v0 = vpop.eup %1966  ;;  %v442_v63 = vmul.f32 %v1965_v41, %v441_v55  ;;  %v175_v56 = vmul.f32 %v174_v8, %v2274_v38  ;;  %v198_v3 = vmul.f32 %v2296_v58, %v197_v59  ;;  %v434_v27 = vand.u32 2147483647, %v2473_v26  ;;  %vm446_vm8 = vmor %vm444_vm2, %vm445_vm7 }
  0xbf   :  { %v1969_v5 = vpop.eup %1968  ;;  %v426_v35 = vmul.f32 %v1967_v0, %v2473_v26  ;;  %v436_v44 = vand.u32 2147483648, %v2473_v26  ;;  %1970 = vrcp.f32 %v2514_v11  ;;  %v462_v15 = vand.u32 2147483647, %v2475_v40 }
  0xc0   :  { %v443_v6 = vadd.f32 %v1965_v41, %v442_v63  ;;  %v454_v12 = vmul.f32 %v1969_v5, %v2475_v40  ;;  %v464_v62 = vand.u32 2147483648, %v2475_v40  ;;  %v177_v1 = vsel %vm176_vm4, %v2274_v38, %v175_v56 }
  0xc1   :  { %v427_v58 = vsub.f32 1.0, %v426_v35  ;;  %v199_v19 = vmul.f32 %v198_v3, %v2239_v21  ;;  %vm200_vm9 = vcmp.eq.f32.partialorder %v2239_v21, inf  ;;  %v180_v37 = vsel %vm178_vm6, %v179_v10, %v177_v1 }
  0xc2   :  { %v447_v53 = vsel %vm446_vm8, %v1965_v41, %v443_v6  ;;  %v455_v4 = vsub.f32 1.0, %v454_v12  ;;  %vm202_vm10 = vcmp.eq.f32.partialorder %v2239_v21, 0.0  ;;  %vm431_vm11 = vweird.f32 %v1967_v0 }
  0xc3   :  { %v2539_v14 = vsel %vm2503_vm3, %v451_v31, %v447_v53  ;;  %v428_v9 = vmul.f32 %v1967_v0, %v427_v58  ;;  %v2541_v22 = vadd.f32 1e-05, %v180_v37  ;;  %vm459_vm12 = vweird.f32 %v1969_v5  ;;  %vm432_vm15 = vmor %vm430_vm5, %vm431_vm11 }
  0xc4   :  { %611 = vrot.lane.b32.xlu0 %v2539_v14, %s2001_s12  ;;  %v456_v23 = vmul.f32 %v1969_v5, %v455_v4  ;;  %v201_v36 = vsel %vm200_vm9, %v2239_v21, %v199_v19  ;;  %v203_v38 = vand.u32 2147483648, %v2239_v21  ;;  %vm435_vm13 = vcmp.eq.f32.partialorder %v434_v27, 8.507059e+37 }
  0xc5   :  { %v1971_v32 = vpop.eup %1970  ;;  %v429_v34 = vadd.f32 %v1967_v0, %v428_v9  ;;  %vm458_vm14 = vweird.f32 %v2475_v40  ;;  %1972 = vrcp.f32 %v2541_v22  ;;  %v437_v57 = vor.u32 1.1754944e-38, %v436_v44 }
  0xc6   :  { %v457_v7 = vadd.f32 %v1969_v5, %v456_v23  ;;  %v465_v33 = vor.u32 1.1754944e-38, %v464_v62  ;;  %v398_v17 = vmul.f32 %v1971_v32, %v2514_v11  ;;  %vm460_vm0 = vmor %vm458_vm14, %vm459_vm12  ;;  %v406_v25 = vand.u32 2147483647, %v2514_v11 }
  0xc7   :  { %v433_v49 = vsel %vm432_vm15, %v1967_v0, %v429_v34  ;;  %v204_v42 = vsel %vm202_vm10, %v203_v38, %v201_v36  ;;  %v149_v52 = vsub.f32 1.5, %v2486_v43  ;;  %vm463_vm1 = vcmp.eq.f32.partialorder %v462_v15, 8.507059e+37 }
  0xc8   :  { %v2556_v40 = vsel %vm435_vm13, %v437_v57, %v433_v49  ;;  %v461_v41 = vsel %vm460_vm0, %v1969_v5, %v457_v7  ;;  %v399_v26 = vsub.f32 1.0, %v398_v17  ;;  %v408_v20 = vand.u32 2147483648, %v2514_v11 }
  0xc9   :  { %609 = vrot.lane.b32.xlu1 %v2556_v40, %s2001_s12  ;;  %v2560_v50 = vsel %vm463_vm1, %v465_v33, %v461_v41  ;;  %v2563_v31 = vadd.f32 1e-05, %v204_v42  ;;  %v150_v54 = vmul.f32 %v2213_v51, %v149_v52  ;;  %v136_v21 = vmul.f32 0.5, %v2497_v48 }
  0xca   :  { %613 = vrot.lane.b32.xlu2 %v2560_v50, %s2001_s12  ;;  %v400_v43 = vmul.f32 %v1971_v32, %v399_v26  ;;  %vm403_vm2 = vweird.f32 %v1971_v32  ;;  %vm402_vm3 = vweird.f32 %v2514_v11  ;;  %vm2570_vm4 = vcmp.eq.f32.partialorder %v406_v25, 8.507059e+37 }
  0xcb   :  { %v1973_v55 = vpop.eup %1972  ;;  %1974 = vrcp.f32 %v2563_v31  ;;  %vm152_vm5 = vcmp.eq.f32.partialorder %v2174_v13, inf  ;;  %v151_v48 = vmul.f32 %v150_v54, %v2174_v13  ;;  %vm154_vm6 = vcmp.eq.f32.partialorder %v2174_v13, 0.0  ;;  %vm404_vm7 = vmor %vm402_vm3, %vm403_vm2 }
  0xcc   :  { %v401_v8 = vadd.f32 %v1971_v32, %v400_v43  ;;  %v384_v51 = vmul.f32 %v1973_v55, %v2541_v22  ;;  %v409_v59 = vor.u32 1.1754944e-38, %v408_v20  ;;  %v392_v10 = vand.u32 2147483647, %v2541_v22 }
  0xcd   :  { %v155_v11 = vand.u32 2147483648, %v2174_v13  ;;  %v161_v0 = vsub.f32 1.5, %v2494_v28  ;;  %v394_v3 = vand.u32 2147483648, %v2541_v22  ;;  %v153_v5 = vsel %vm152_vm5, %v2174_v13, %v151_v48 }
  0xce   :  { %v405_v63 = vsel %vm404_vm7, %v1971_v32, %v401_v8  ;;  %v385_v56 = vsub.f32 1.0, %v384_v51  ;;  %vm389_vm8 = vweird.f32 %v1973_v55  ;;  %vm164_vm9 = vcmp.eq.f32.partialorder %v2280_v16, inf }
  0xcf   :  { %v2586_v35 = vsel %vm2570_vm4, %v409_v59, %v405_v63  ;;  %v156_v27 = vsel %vm154_vm6, %v155_v11, %v153_v5  ;;  %v162_v44 = vmul.f32 %v2329_v39, %v161_v0  ;;  %v167_v28 = vand.u32 2147483648, %v2280_v16  ;;  %v2620_v0 = vld [vmem:[%s3673_s2] sm:$0xf] }
  0xd0   :  { %605 = vrot.lane.b32.xlu0 %v2586_v35, %s2001_s12  ;;  %v386_v6 = vmul.f32 %v1973_v55, %v385_v56  ;;  %v326_v12 = vadd.f32 1e-05, %v156_v27  ;;  %vm166_vm10 = vcmp.eq.f32.partialorder %v2280_v16, 0.0  ;;  %v137_v62 = vsub.f32 1.5, %v136_v21 }
  0xd1   :  { %v1975_v15 = vpop.eup %1974  ;;  %v163_v13 = vmul.f32 %v162_v44, %v2280_v16  ;;  %vm388_vm11 = vweird.f32 %v2541_v22  ;;  %vm393_vm13 = vcmp.eq.f32.partialorder %v392_v10, 8.507059e+37  ;;  %v395_v1 = vor.u32 1.1754944e-38, %v394_v3 }
  0xd2   :  { %v387_v58 = vadd.f32 %v1973_v55, %v386_v6  ;;  %v412_v39 = vmul.f32 %v1975_v15, %v2563_v31  ;;  %1976 = vrcp.f32 %v326_v12  ;;  %vm390_vm12 = vmor %vm388_vm11, %vm389_vm8  ;;  %v138_v9 = vmul.f32 %v2403_v61, %v137_v62 }
  0xd3   :  { %v165_v19 = vsel %vm164_vm9, %v2280_v16, %v163_v13  ;;  %v422_v36 = vand.u32 2147483648, %v2563_v31  ;;  %vm417_vm14 = vweird.f32 %v1975_v15  ;;  %v420_v32 = vand.u32 2147483647, %v2563_v31 }
  0xd4   :  { %v391_v53 = vsel %vm390_vm12, %v1973_v55, %v387_v58  ;;  %v413_v4 = vsub.f32 1.0, %v412_v39  ;;  %v168_v37 = vsel %vm166_vm10, %v167_v28, %v165_v19  ;;  %v139_v34 = vmul.f32 %v138_v9, %v2344_v46  ;;  %v2634_v19 = vld [vmem:[%s3672_s0] sm:$0xff]  ;;  %v2654_v9 = vld [vmem:[%s3672_s0 + $0x18] sm:$0xff] }
  0xd5   :  { %v2600_v23 = vsel %vm393_vm13, %v395_v1, %v391_v53  ;;  %v327_v38 = vadd.f32 1e-05, %v168_v37  ;;  %vm140_vm15 = vcmp.eq.f32.partialorder %v2344_v46, inf  ;;  %vm416_vm0 = vweird.f32 %v2563_v31 }
  0xd6   :  { %603 = vrot.lane.b32.xlu1 %v2600_v23, %s2001_s12  ;;  %v414_v22 = vmul.f32 %v1975_v15, %v413_v4  ;;  %v141_v61 = vsel %vm140_vm15, %v2344_v46, %v139_v34  ;;  %v143_v7 = vand.u32 2147483648, %v2344_v46  ;;  %vm418_vm1 = vmor %vm416_vm0, %vm417_vm14  ;;  %v423_v33 = vor.u32 1.1754944e-38, %v422_v36  ;;  %v2644_v4 = vld [vmem:[%s3672_s0 + $0x8] sm:$0xff] }
  0xd7   :  { %1978 = vrcp.f32 %v327_v38  ;;  %vm142_vm2 = vcmp.eq.f32.partialorder %v2344_v46, 0.0  ;;  %vm421_vm3 = vcmp.eq.f32.partialorder %v420_v32, 8.507059e+37  ;;  %v366_v26 = vand.u32 2147483648, %v326_v12 }
  0xd8   :  { %v1977_v16 = vpop.eup %1976  ;;  %v415_v57 = vadd.f32 %v1975_v15, %v414_v22  ;;  %v144_v25 = vsel %vm142_vm2, %v143_v7, %v141_v61  ;;  %v364_v54 = vand.u32 2147483647, %v326_v12  ;;  %vm360_vm5 = vweird.f32 %v326_v12  ;;  %v2665_v22 = vld [vmem:[%s3674_s1] sm:$0xf]  ;;  %v1988_v7 = vld [vmem:[%s3672_s0 + $0x78] sm:$0xff] }
  0xd9   :  { %v356_v17 = vmul.f32 %v1977_v16, %v326_v12  ;;  %v325_v41 = vadd.f32 1e-05, %v144_v25  ;;  %vm361_vm4 = vweird.f32 %v1977_v16  ;;  %v367_v46 = vor.u32 1.1754944e-38, %v366_v26  ;;  %v1990_v25 = vld [vmem:[%s3672_s0 + $0x58] sm:$0xff] }
  0xda   :  { %v419_v49 = vsel %vm418_vm1, %v1975_v15, %v415_v57  ;;  %vm362_vm6 = vmor %vm360_vm5, %vm361_vm4  ;;  %vm365_vm7 = vcmp.eq.f32.partialorder %v364_v54, 8.507059e+37  ;;  %v380_v8 = vand.u32 2147483648, %v327_v38  ;;  %v378_v59 = vand.u32 2147483647, %v327_v38 }
  0xdb   :  { %v2612_v42 = vsel %vm421_vm3, %v423_v33, %v419_v49  ;;  %v357_v52 = vsub.f32 1.0, %v356_v17  ;;  %1980 = vrcp.f32 %v325_v41  ;;  %vm374_vm9 = vweird.f32 %v327_v38  ;;  %v1989_v17 = vld [vmem:[%s3672_s0 + $0x68] sm:$0xff] }
  0xdc   :  { %607 = vrot.lane.b32.xlu2 %v2612_v42, %s2001_s12  ;;  %v381_v56 = vor.u32 1.1754944e-38, %v380_v8  ;;  %vm379_vm11 = vcmp.eq.f32.partialorder %v378_v59, 8.507059e+37  ;;  %v921_v44 = vrot.slane %v2620_v0, 7  ;;  %v352_v6 = vand.u32 2147483648, %v325_v41  ;;  %v1993_v59 = vld [vmem:[%s3672_s0 + $0x40] sm:$0xff] }
  0xdd   :  { %v1979_v20 = vpop.eup %1978  ;;  %v358_v31 = vmul.f32 %v1977_v16, %v357_v52  ;;  %v350_v28 = vand.u32 2147483647, %v325_v41  ;;  %v913_v15 = vsub.f32 0.0, %v2620_v0  ;;  %vm346_vm13 = vweird.f32 %v325_v41 }
  0xde   :  { %v370_v21 = vmul.f32 %v1979_v20, %v327_v38  ;;  %vm375_vm8 = vweird.f32 %v1979_v20  ;;  %v353_v62 = vor.u32 1.1754944e-38, %v352_v6  ;;  %v2658_v36 = vmul.f32 %v2654_v9, %v2600_v23  ;;  %v1987_v23 = vld [vmem:[%s3672_s0 + $0x70] sm:$0xff] }
  0xdf   :  { %v359_v43 = vadd.f32 %v1977_v16, %v358_v31  ;;  %vm376_vm10 = vmor %vm374_vm9, %vm375_vm8  ;;  %vm351_vm15 = vcmp.eq.f32.partialorder %v350_v28, 8.507059e+37  ;;  %v915_v39 = vrot.slane %v913_v15, 1  ;;  %vm872_vm0 = vcmask 1043456  }
  0xe0   :  { %v371_v55 = vsub.f32 1.0, %v370_v21  ;;  %v873_v57 = vsel %vm872_vm0, %v2665_v22, 0.0  ;;  %v2691_v26 = vmul.f32 %v1989_v17, %v2346_v47  ;;  %v2697_v31 = vmul.f32 %v1990_v25, %v2440_v60  ;;  %v1991_v21 = vld [vmem:[%s3672_s0 + $0x60] sm:$0xff] }
  0xe1   :  { %v363_v45 = vsel %vm362_vm6, %v1977_v16, %v359_v43  ;;  %v1981_v10 = vpop.eup %1980  ;;  %vm661_vm1 = vcmask 261120   ;;  %vm838_vm2 = vcmask 523264   ;;  %v2739_v43 = vmul.f32 %v1991_v21, %v2406_v24  ;;  %v1992_v24 = vld [vmem:[%s3672_s0 + $0x50] sm:$0xff] }
  0xe2   :  { %v368_v51 = vsel %vm365_vm7, %v367_v46, %v363_v45  ;;  %v372_v48 = vmul.f32 %v1979_v20, %v371_v55  ;;  %v342_v63 = vmul.f32 %v1981_v10, %v325_v41  ;;  %vm347_vm12 = vweird.f32 %v1981_v10 }
  0xe3   :  { %599 = vrot.lane.b32.xlu0 %v368_v51, %s2001_s12  ;;  %vm348_vm14 = vmor %vm346_vm13, %vm347_vm12  ;;  %v2647_v37 = vmul.f32 %v2644_v4, %v368_v51  ;;  %v2688_v41 = vmul.f32 %v1988_v7, %v2317_v30  ;;  %v2766_v51 = vmul.f32 %v1992_v24, %v2395_v29  ;;  %vm926_vm3 = vcmask 1040384  }
  0xe4   :  { %v373_v11 = vadd.f32 %v1979_v20, %v372_v48  ;;  %v343_v5 = vsub.f32 1.0, %v342_v63  ;;  %vm1305_vm8 = vcmask 31744  }
  0xe6   :  { %v377_v3 = vsel %vm376_vm10, %v1979_v20, %v373_v11  ;;  %v344_v12 = vmul.f32 %v1981_v10, %v343_v5  ;;  %v2694_v20 = vmul.f32 %v1987_v23, %v2420_v18 }
  0xe7   :  { %v2622_v27 = vsel %vm379_vm11, %v381_v56, %v377_v3  ;;  %v1994_v56 = vld [vmem:[%s3672_s0 + $0x48] sm:$0xff] }
  0xe8   :  { %601 = vrot.lane.b32.xlu2 %v2622_v27, %s2001_s12  ;;  %v345_v13 = vadd.f32 %v1981_v10, %v344_v12  ;;  %v2802_v3 = vmul.f32 %v1994_v56, %v2490_v2  ;;  %v1996_v2 = vld [vmem:[%s3672_s0 + $0x38] sm:$0xff] }
  0xea   :  { %v349_v58 = vsel %vm348_vm14, %v1981_v10, %v345_v13  ;;  %v2773_v10 = vmul.f32 %v1993_v59, %v2560_v50  ;;  %v1997_v13 = vld [vmem:[%s3672_s0 + $0x28] sm:$0xff] }
  0xeb   :  { %922 = vrot.lane.b32.xlu0 %v921_v44, %s2001_s12  ;;  %v354_v1 = vsel %vm351_vm15, %v353_v62, %v349_v58  ;;  %v1995_v44 = vld [vmem:[%s3672_s0 + $0x10] sm:$0xff]  ;;  %v2833_v62 = vmul.f32 %v1997_v13, %v2612_v42 }
  0xec   :  { %597 = vrot.lane.b32.xlu1 %v354_v1, %s2001_s12  ;;  %v2637_v53 = vmul.f32 %v2634_v19, %v354_v1  ;;  %v567_v6 = vmul.f32 %v1995_v44, %v2622_v27  ;;  %v2827_v27 = vmul.f32 %v1996_v2, %v2539_v14 }
  0xf0   :  { %916 = vrot.lane.b32.xlu2 %v915_v39, %s2001_s12 }
  0xf3   :  { %774 = vrot.lane.b32.xlu0 %v2637_v53, %s2001_s12 }
  0xf8   :  { %776 = vrot.lane.b32.xlu2 %v2647_v37, %s2001_s12 }
  0xfb   :  { %780 = vrot.lane.b32.xlu0 %v2658_v36, %s2001_s12 }
 0x107   :  { %v626_v38 = vpop.permute.xlu2 %625 }
 0x108   :  { %v2672_v61 = vmul.f32 %v1987_v23, %v626_v38 }
 0x10a   :  { %v2707_v30 = vsel %vm661_vm1, %v2694_v20, %v2672_v61 }
 0x10b   :  { %853 = vst.msk [vmem:[%s3675_s4 + $0x70] sm:$0xff] %vm838_vm2, %v2707_v30 }
 0x10f   :  { %v620_v16 = vpop.permute.xlu2 %619 }
 0x110   :  { %v656_v52 = vmul.f32 %v1990_v25, %v620_v16 }
 0x112   :  { %v2722_v18 = vsel %vm661_vm1, %v2697_v31, %v656_v52  ;;  %v689_v58 = vsub.f32 0.0, %v656_v52 }
 0x113   :  { %v628_v32 = vpop.permute.xlu1 %627  ;;  %850 = vst.msk [vmem:[%s3675_s4 + $0x58] sm:$0xff] %vm838_vm2, %v2722_v18 }
 0x114   :  { %v2677_v33 = vmul.f32 %v1988_v7, %v628_v32  ;;  %v1998_v32 = vld [vmem:[%s3672_s0 + $0x30] sm:$0xff]  ;;  %v1999_v7 = vld [vmem:[%s3672_s0 + $0x20] sm:$0xff] }
 0x115   :  { %v624_v34 = vpop.permute.xlu0 %623 }
 0x116   :  { %v2682_v49 = vmul.f32 %v1989_v17, %v624_v34  ;;  %874 = vadd.xlane.f32.xlu1 %v873_v57  ;;  %v2702_v54 = vsel %vm661_vm1, %v2688_v41, %v2677_v33  ;;  %v2865_v34 = vmul.f32 %v1998_v32, %v2556_v40  ;;  %v2885_v17 = vmul.f32 %v1999_v7, %v2586_v35 }
 0x117   :  { %854 = vst.msk [vmem:[%s3675_s4 + $0x78] sm:$0xff] %vm838_vm2, %v2702_v54  ;;  %877 = vmatpush.msra.mxu0 %v2702_v54 }
 0x118   :  { %v2712_v47 = vsel %vm661_vm1, %v2691_v26, %v2682_v49 }
 0x119   :  { %878 = vmatpush.msra.mxu0 %v2707_v30  ;;  %852 = vst.msk [vmem:[%s3675_s4 + $0x68] sm:$0xff] %vm838_vm2, %v2712_v47 }
 0x11b   :  { %879 = vmatpush.msra.mxu0 %v2712_v47 }
 0x11d   :  { %v618_v55 = vpop.permute.xlu0 %617 }
 0x11e   :  { %v622_v60 = vpop.permute.xlu1 %621  ;;  %v2757_v8 = vmul.f32 %v1992_v24, %v618_v55 }
 0x11f   :  { %v2741_v46 = vmul.f32 %v1991_v21, %v622_v60 }
 0x120   :  { %v2780_v63 = vsel %vm661_vm1, %v2766_v51, %v2757_v8 }
 0x121   :  { %v2752_v45 = vsel %vm661_vm1, %v2739_v43, %v2741_v46  ;;  %849 = vst.msk [vmem:[%s3675_s4 + $0x50] sm:$0xff] %vm838_vm2, %v2780_v63 }
 0x122   :  { %851 = vst.msk [vmem:[%s3675_s4 + $0x60] sm:$0xff] %vm838_vm2, %v2752_v45  ;;  %880 = vmatpush.msra.mxu0 %v2752_v45 }
 0x124   :  { %881 = vmatpush.msra.mxu0 %v2722_v18  ;;  %v614_v48 = vpop.permute.xlu2 %613 }
 0x125   :  { %v2775_v11 = vmul.f32 %v1993_v59, %v614_v48 }
 0x126   :  { %882 = vmatpush.msra.mxu0 %v2780_v63 }
 0x127   :  { %v2791_v29 = vsel %vm661_vm1, %v2773_v10, %v2775_v11 }
 0x128   :  { %847 = vst.msk [vmem:[%s3675_s4 + $0x40] sm:$0xff] %vm838_vm2, %v2791_v29 }
 0x12c   :  { %v616_v50 = vpop.permute.xlu1 %615 }
 0x12d   :  { %v2804_v5 = vmul.f32 %v1994_v56, %v616_v50 }
 0x12f   :  { %v2813_v12 = vsel %vm661_vm1, %v2802_v3, %v2804_v5  ;;  %778 = vrot.lane.b32.xlu1 %v567_v6, %s2001_s12 }
 0x130   :  { %848 = vst.msk [vmem:[%s3675_s4 + $0x48] sm:$0xff] %vm838_vm2, %v2813_v12  ;;  %883 = vmatpush.msra.mxu0 %v2813_v12 }
 0x132   :  { %884 = vmatpush.msra.mxu0 %v2791_v29 }
 0x136   :  { %v608_v28 = vpop.permute.xlu2 %607  ;;  %v612_v15 = vpop.permute.xlu0 %611 }
 0x137   :  { %v2835_v39 = vmul.f32 %v1997_v13, %v608_v28  ;;  %v2837_v1 = vmul.f32 %v1996_v2, %v612_v15  ;;  %732 = vrot.lane.b32.xlu1 %v689_v58, %s2000_s30 }
 0x139   :  { %v2843_v14 = vsel %vm661_vm1, %v2827_v27, %v2837_v1  ;;  %v2848_v38 = vsel %vm661_vm1, %v2833_v62, %v2835_v39 }
 0x13a   :  { %846 = vst.msk [vmem:[%s3675_s4 + $0x38] sm:$0xff] %vm838_vm2, %v2843_v14  ;;  %885 = vmatpush.msra.mxu0 %v2843_v14 }
 0x13b   :  { %v610_v42 = vpop.permute.xlu1 %609  ;;  %844 = vst.msk [vmem:[%s3675_s4 + $0x28] sm:$0xff] %vm838_vm2, %v2848_v38 }
 0x13c   :  { %v2867_v16 = vmul.f32 %v1998_v32, %v610_v42 }
 0x13e   :  { %v2872_v57 = vsel %vm661_vm1, %v2865_v34, %v2867_v16 }
 0x13f   :  { %845 = vst.msk [vmem:[%s3675_s4 + $0x30] sm:$0xff] %vm838_vm2, %v2872_v57  ;;  %886 = vmatpush.msra.mxu0 %v2872_v57 }
 0x141   :  { %887 = vmatpush.msra.mxu0 %v2848_v38 }
 0x142   :  { %v602_v23 = vpop.permute.xlu2 %601  ;;  %v606_v40 = vpop.permute.xlu0 %605 }
 0x143   :  { %v647_v25 = vmul.f32 %v1995_v44, %v602_v23  ;;  %v649_v52 = vmul.f32 %v1999_v7, %v606_v40 }
 0x145   :  { %v2889_v60 = vsel %vm661_vm1, %v2885_v17, %v649_v52  ;;  %v664_v21 = vsel %vm661_vm1, %v567_v6, %v647_v25 }
 0x146   :  { %843 = vst.msk [vmem:[%s3675_s4 + $0x20] sm:$0xff] %vm838_vm2, %v2889_v60  ;;  %888 = vmatpush.msra.mxu0 %v2889_v60 }
 0x147   :  { %841 = vst.msk [vmem:[%s3675_s4 + $0x10] sm:$0xff] %vm838_vm2, %v664_v21 }
 0x148   :  { %v604_v35 = vpop.permute.xlu1 %603 }
 0x149   :  { %v648_v55 = vmul.f32 %v2654_v9, %v604_v35 }
 0x14a   :  { %v917_v44 = vpop.permute.xlu2 %916 }
 0x14b   :  { %v665_v24 = vsel %vm661_vm1, %v2658_v36, %v648_v55  ;;  %v919_v9 = vsel %vm661_vm1, %v2620_v0, %v917_v44  ;;  %v681_v28 = vsub.f32 0.0, %v648_v55 }
 0x14c   :  { %842 = vst.msk [vmem:[%s3675_s4 + $0x18] sm:$0xff] %vm838_vm2, %v665_v24  ;;  %889 = vmatpush.msra.mxu0 %v665_v24  ;;  %v929_v36 = vrot.slane %v919_v9, 2 }
 0x14e   :  { %890 = vmatpush.msra.mxu0 %v664_v21 }
 0x155   :  { %v600_v48 = vpop.permute.xlu0 %599 }
 0x156   :  { %v646_v59 = vmul.f32 %v2644_v4, %v600_v48 }
 0x158   :  { %v679_v50 = vsub.f32 0.0, %v646_v59  ;;  %v663_v56 = vsel %vm661_vm1, %v2647_v37, %v646_v59 }
 0x159   :  { %840 = vst.msk [vmem:[%s3675_s4 + $0x8] sm:$0xff] %vm838_vm2, %v663_v56  ;;  %891 = vmatpush.msra.mxu0 %v663_v56 }
 0x15a   :  { %712 = vrot.lane.b32.xlu0 %v679_v50, %s2000_s30 }
 0x15d   :  { %v923_v6 = vpop.permute.xlu0 %922 }
 0x15e   :  { %v925_v4 = vsel %vm661_vm1, %v2620_v0, %v923_v6  ;;  %v598_v15 = vpop.permute.xlu1 %597  ;;  %v683_v0 = vsub.f32 0.0, %v2835_v39  ;;  %v690_v39 = vsub.f32 0.0, %v2741_v46 }
 0x15f   :  { %v932_v2 = vrot.slane %v925_v4, 2  ;;  %v927_v37 = vsel %vm926_vm3, %v919_v9, %v925_v4  ;;  %v645_v13 = vmul.f32 %v2634_v19, %v598_v15  ;;  %v680_v19 = vsub.f32 0.0, %v647_v25 }
 0x160   :  { %1839 = vmatpush.xpose.msk.msra.mxu1 %vm838_vm2, %v927_v37  ;;  %1891 = vmatpush.xpose.msk.msra.mxu2 %vm838_vm2, %v927_v37 }
 0x161   :  { %v2924_v58 = vsel %vm926_vm3, %v929_v36, %v932_v2  ;;  %v678_v42 = vsub.f32 0.0, %v645_v13  ;;  %v662_v32 = vsel %vm661_vm1, %v2637_v53, %v645_v13  ;;  %v685_v53 = vsub.f32 0.0, %v2837_v1 }
 0x162   :  { %716 = vrot.lane.b32.xlu0 %v681_v28, %s2000_s30  ;;  %839 = vst.msk [vmem:[%s3675_s4] sm:$0xff] %vm838_vm2, %v662_v32  ;;  %892 = vmatpush.msra.mxu0 %v662_v32 }
 0x163   :  { %1850 = vmatmul.msk.f32.vlgmr.msra.gmra.mxu2 %vm838_vm2, %v2780_v63  ;;  %1840 = vmatmul.msk.f32.vlgmr.msra.gmra.mxu1 %vm838_vm2, %v662_v32  ;;  %v682_v63 = vsub.f32 0.0, %v649_v52 }
 0x164   :  { %710 = vrot.lane.b32.xlu2 %v678_v42, %s2000_s30  ;;  %893 = vmatmul.f32.vlgmr.msra.gmra.mxu0 %v2665_v22  ;;  %v687_v22 = vsub.f32 0.0, %v2804_v5  ;;  %v688_v5 = vsub.f32 0.0, %v2757_v8 }
 0x16a   :  { %720 = vrot.lane.b32.xlu0 %v683_v0, %s2000_s30 }
 0x16b   :  { %1851 = vmatmul.msk.f32.gmra.mxu2 %vm838_vm2, %v2722_v18  ;;  %1841 = vmatmul.msk.f32.gmra.mxu1 %vm838_vm2, %v663_v56  ;;  %v684_v18 = vsub.f32 0.0, %v2867_v16 }
 0x16c   :  { %714 = vrot.lane.b32.xlu2 %v680_v19, %s2000_s30 }
 0x172   :  { %724 = vrot.lane.b32.xlu0 %v685_v53, %s2000_s30 }
 0x173   :  { %1852 = vmatmul.msk.f32.gmra.mxu2 %vm838_vm2, %v2752_v45  ;;  %1842 = vmatmul.msk.f32.gmra.mxu1 %vm838_vm2, %v664_v21  ;;  %v686_v45 = vsub.f32 0.0, %v2775_v11 }
 0x174   :  { %718 = vrot.lane.b32.xlu2 %v682_v63, %s2000_s30 }
 0x17a   :  { %728 = vrot.lane.b32.xlu0 %v687_v22, %s2000_s30 }
 0x17b   :  { %1853 = vmatmul.msk.f32.gmra.mxu2 %vm838_vm2, %v2712_v47  ;;  %1843 = vmatmul.msk.f32.gmra.mxu1 %vm838_vm2, %v665_v24  ;;  %v692_v47 = vsub.f32 0.0, %v2672_v61  ;;  %v693_v61 = vsub.f32 0.0, %v2677_v33 }
 0x17c   :  { %722 = vrot.lane.b32.xlu2 %v684_v18, %s2000_s30 }
 0x182   :  { %734 = vrot.lane.b32.xlu0 %v690_v39, %s2000_s30 }
 0x183   :  { %1854 = vmatmul.msk.f32.gmra.mxu2 %vm838_vm2, %v2707_v30  ;;  %1844 = vmatmul.msk.f32.gmra.mxu1 %vm838_vm2, %v2889_v60  ;;  %v691_v30 = vsub.f32 0.0, %v2682_v49  ;;  %v775_v49 = vpop.permute.xlu0 %774 }
 0x184   :  { %726 = vrot.lane.b32.xlu2 %v686_v45, %s2000_s30 }
 0x189   :  { %v875_v46 = vpop.xlane.xlu1 %874 }
 0x18a   :  { %738 = vrot.lane.b32.xlu0 %v692_v47, %s2000_s30  ;;  %v876_v11 = vmax.f32 %v875_v46, 1.0 }
 0x18b   :  { %1855 = vmatmul.msk.f32.gmra.mxu2 %vm838_vm2, %v2702_v54  ;;  %1845 = vmatmul.msk.f32.gmra.mxu1 %vm838_vm2, %v2848_v38  ;;  %v777_v54 = vpop.permute.xlu2 %776  ;;  %v781_v33 = vpop.permute.xlu0 %780 }
 0x18c   :  { %730 = vrot.lane.b32.xlu2 %v688_v5, %s2000_s30  ;;  %1982 = vrcp.f32 %v876_v11  ;;  %vm902_vm4 = vweird.f32 %v876_v11  ;;  %v908_v35 = vand.u32 2147483648, %v876_v11  ;;  %v906_v24 = vand.u32 2147483647, %v876_v11 }
 0x18e   :  { %v909_v48 = vor.u32 1.1754944e-38, %v908_v35  ;;  %vm907_vm7 = vcmp.eq.f32.partialorder %v906_v24, 8.507059e+37 }
 0x193   :  { %1846 = vmatmul.msk.f32.gmra.mxu1 %vm838_vm2, %v2872_v57  ;;  %v1983_v57 = vpop.eup %1982 }
 0x194   :  { %736 = vrot.lane.b32.xlu2 %v691_v30, %s2000_s30  ;;  %v898_v7 = vmul.f32 %v1983_v57, %v876_v11  ;;  %vm903_vm5 = vweird.f32 %v1983_v57 }
 0x195   :  { %vm904_vm6 = vmor %vm902_vm4, %vm903_vm5 }
 0x196   :  { %v899_v25 = vsub.f32 1.0, %v898_v7 }
 0x198   :  { %v900_v21 = vmul.f32 %v1983_v57, %v899_v25 }
 0x19a   :  { %v901_v55 = vadd.f32 %v1983_v57, %v900_v21 }
 0x19b   :  { %1847 = vmatmul.msk.f32.gmra.mxu1 %vm838_vm2, %v2843_v14  ;;  %v2002_v14 = vmov 1  }
 0x19c   :  { %740 = vrot.lane.b32.xlu2 %v693_v61, %s2000_s30  ;;  %1902 = vset.pattern.permute.xlu1 %v2002_v14  ;;  %v905_v59 = vsel %vm904_vm6, %v1983_v57, %v901_v55 }
 0x19d   :  { %1900 = vset.pattern.permute.xlu2 %v2002_v14  ;;  %v910_v50 = vsel %vm907_vm7, %v909_v48, %v905_v59 }
 0x1a3   :  { %1848 = vmatmul.msk.f32.gmra.mxu1 %vm838_vm2, %v2791_v29  ;;  %v2003_v29 = vmov 0  }
 0x1a4   :  { %1899 = vset.pattern.permute.xlu0 %v2003_v29 }
 0x1ab   :  { %1849 = vmatmul.msk.f32.gmra.mxu1 %vm838_vm2, %v2813_v12  ;;  %v779_v12 = vpop.permute.xlu1 %778 }
 0x1be   :  { %v711_v8 = vpop.permute.xlu2 %710 }
 0x1bf   :  { %v822_v1 = vsel %vm661_vm1, %v711_v8, %v775_v49  ;;  %v3047_v8 = vpop.permute.xlu1 %732 }
 0x1c0   :  { %855 = vst.msk [vmem:[%s3676_s5] sm:$0xff] %vm838_vm2, %v822_v1 }
 0x1c6   :  { %v715_v38 = vpop.permute.xlu2 %714 }
 0x1c7   :  { %v824_v16 = vsel %vm661_vm1, %v715_v38, %v779_v12 }
 0x1c8   :  { %857 = vst.msk [vmem:[%s3676_s5 + $0x10] sm:$0xff] %vm838_vm2, %v824_v16 }
 0x1cc   :  { %v713_v23 = vpop.permute.xlu0 %712 }
 0x1cd   :  { %v823_v40 = vsel %vm661_vm1, %v713_v23, %v777_v54 }
 0x1ce   :  { %856 = vst.msk [vmem:[%s3676_s5 + $0x8] sm:$0xff] %vm838_vm2, %v823_v40 }
 0x1d4   :  { %v717_v52 = vpop.permute.xlu0 %716 }
 0x1d5   :  { %v825_v60 = vsel %vm661_vm1, %v717_v52, %v781_v33 }
 0x1d6   :  { %858 = vst.msk [vmem:[%s3676_s5 + $0x18] sm:$0xff] %vm838_vm2, %v825_v60 }
 0x1dc   :  { %v3042_v61 = vpop.permute.xlu0 %720 }
 0x1e0   :  { %v1003_v56 = vpop.f32.mrf.mxu1 }
 0x1e1   :  { %v894_v44 = vpop.f32.mrf.mxu0  ;;  %1175 = vperm.xlu2 %1900, %v1003_v56   ;;  %1079 = vperm.xlu0 %1899, %v1003_v56  }
 0x1e2   :  { %v911_v9 = vmul.f32 %v910_v50, %v894_v44 }
 0x1e4   :  { %1856 = vmatpush.xpose.msk.msrb.mxu2 %vm838_vm2, %v911_v9  ;;  %v3045_v49 = vpop.permute.xlu0 %724 }
 0x1e6   :  { %v1033_v36 = vpop.f32.mrf.mxu2 }
 0x1e7   :  { %1215 = vperm.xlu1 %1902, %v1033_v36   ;;  %1857 = vmatmul.msk.f32.vlgmr.msrb.gmra.mxu2 %vm838_vm2, %v2924_v58  ;;  %v3017_v58 = vpop.permute.xlu2 %718 }
 0x1e8   :  { %v1006_v6 = vpop.f32.mrf.mxu1 }
 0x1e9   :  { %1901 = vset.pattern.permute.xlu2 %v2003_v29  ;;  %1908 = vset.pattern.permute.xlu0 %v2002_v14 }
 0x1ea   :  { %1129 = vperm.xlu2 %1901, %v1033_v36  }
 0x1ec   :  { %v3049_v11 = vpop.permute.xlu0 %728 }
 0x1ee   :  { %v1036_v4 = vpop.f32.mrf.mxu2 }
 0x1ef   :  { %1219 = vperm.xlu1 %1902, %v1036_v4   ;;  %v3021_v0 = vpop.permute.xlu2 %722 }
 0x1f0   :  { %v1009_v2 = vpop.f32.mrf.mxu1 }
 0x1f2   :  { %1084 = vperm.xlu2 %1901, %v1006_v6  }
 0x1f6   :  { %v1039_v37 = vpop.f32.mrf.mxu2 }
 0x1f7   :  { %1905 = vset.pattern.permute.xlu1 %v2003_v29  ;;  %1223 = vperm.xlu0 %1908, %v1039_v37   ;;  %v3026_v53 = vpop.permute.xlu2 %726 }
 0x1f8   :  { %1089 = vperm.xlu1 %1905, %v1009_v2   ;;  %v1012_v28 = vpop.f32.mrf.mxu1 }
 0x1fa   :  { %1903 = vset.pattern.permute.xlu2 %v2002_v14 }
 0x1fb   :  { %1179 = vperm.xlu2 %1903, %v1006_v6  }
 0x1fe   :  { %v1042_v15 = vpop.f32.mrf.mxu2 }
 0x1ff   :  { %v3029_v22 = vpop.permute.xlu2 %730 }
 0x200   :  { %1094 = vperm.xlu1 %1905, %v1012_v28   ;;  %v3015_v13 = vpop.f32.mrf.mxu1 }
 0x203   :  { %1904 = vset.pattern.permute.xlu2 %v2003_v29 }
 0x204   :  { %1134 = vperm.xlu2 %1904, %v1036_v4  }
 0x206   :  { %v1045_v42 = vpop.f32.mrf.mxu2 }
 0x207   :  { %1231 = vperm.xlu0 %1908, %v1045_v42   ;;  %v3034_v45 = vpop.permute.xlu2 %736 }
 0x208   :  { %1909 = vset.pattern.permute.xlu1 %v2002_v14  ;;  %v1018_v32 = vpop.f32.mrf.mxu1 }
 0x209   :  { %1187 = vperm.xlu1 %1909, %v1012_v28  }
 0x20c   :  { %1906 = vset.pattern.permute.xlu2 %v2002_v14 }
 0x20d   :  { %1183 = vperm.xlu2 %1906, %v1009_v2  }
 0x20e   :  { %v1048_v47 = vpop.f32.mrf.mxu2 }
 0x20f   :  { %1914 = vset.pattern.permute.xlu0 %v2003_v29  ;;  %v3037_v5 = vpop.permute.xlu2 %740 }
 0x210   :  { %v1021_v19 = vpop.f32.mrf.mxu1  ;;  %3692 = vst [vmem:[#allocation2_spill] sm:$0xff] %v3037_v5 }
 0x211   :  { %1911 = vset.pattern.permute.xlu1 %v2003_v29 }
 0x212   :  { %1149 = vperm.xlu1 %1911, %v1045_v42  }
 0x215   :  { %1907 = vset.pattern.permute.xlu2 %v2003_v29 }
 0x216   :  { %1139 = vperm.xlu2 %1907, %v1039_v37  }
 0x218   :  { %v1024_v63 = vpop.f32.mrf.mxu1 }
 0x219   :  { %1114 = vperm.xlu0 %1914, %v1024_v63  }
 0x21a   :  { %1104 = vperm.xlu1 %1911, %v1018_v32  }
 0x21e   :  { %1144 = vperm.xlu2 %1907, %v1042_v15  }
 0x220   :  { %v1027_v18 = vpop.f32.mrf.mxu1 }
 0x221   :  { %1917 = vset.pattern.permute.xlu0 %v2002_v14 }
 0x222   :  { %1912 = vset.pattern.permute.xlu1 %v2002_v14 }
 0x223   :  { %1195 = vperm.xlu1 %1912, %v1018_v32  }
 0x226   :  { %1910 = vset.pattern.permute.xlu2 %v2002_v14 }
 0x227   :  { %1227 = vperm.xlu2 %1910, %v1042_v15  }
 0x228   :  { %v1030_v39 = vpop.f32.mrf.mxu1 }
 0x229   :  { %1211 = vperm.xlu0 %1917, %v1030_v39  }
 0x22b   :  { %1235 = vperm.xlu1 %1912, %v1048_v47  }
 0x22f   :  { %1913 = vset.pattern.permute.xlu2 %v2003_v29 }
 0x230   :  { %1154 = vperm.xlu2 %1913, %v1048_v47  }
 0x233   :  { %1199 = vperm.xlu1 %1912, %v1021_v19  }
 0x238   :  { %1109 = vperm.xlu2 %1913, %v1021_v19  }
 0x23b   :  { %1916 = vset.pattern.permute.xlu1 %v2003_v29  ;;  %v3040_v30 = vpop.permute.xlu2 %1175  ;;  %v3051_v29 = vpop.permute.xlu0 %734 }
 0x23c   :  { %1119 = vperm.xlu1 %1916, %v1027_v18  }
 0x240   :  { %1915 = vset.pattern.permute.xlu2 %v2002_v14 }
 0x241   :  { %1203 = vperm.xlu2 %1915, %v1024_v63  }
 0x243   :  { %v3053_v16 = vpop.permute.xlu0 %738 }
 0x244   :  { %1124 = vperm.xlu1 %1916, %v1030_v39   ;;  %v1130_v54 = vpop.permute.xlu2 %1129 }
 0x249   :  { %1207 = vperm.xlu2 %1915, %v1027_v18  }
 0x24c   :  { %v1085_v46 = vpop.permute.xlu2 %1084 }
 0x253   :  { %v1080_v55 = vpop.permute.xlu0 %1079 }
 0x255   :  { %v1180_v1 = vpop.permute.xlu2 %1179 }
 0x259   :  { %v1216_v33 = vpop.permute.xlu1 %1215 }
 0x25e   :  { %v1135_v12 = vpop.permute.xlu2 %1134 }
 0x261   :  { %v1220_v38 = vpop.permute.xlu1 %1219 }
 0x267   :  { %v1184_v14 = vpop.permute.xlu2 %1183 }
 0x269   :  { %v3077_v63 = vpop.permute.xlu0 %1223 }
 0x26a   :  { %v1090_v57 = vpop.permute.xlu1 %1089  ;;  %v1074_v23 = vpop.f32.mrf.mxu2 }
 0x26b   :  { %v3055_v40 = vperm.slane %v1074_v23, 0  ;;  %v3057_v7 = vperm.slane %v1074_v23, 1 }
 0x26d   :  { %v1160_v25 = vadd.f32 %v3055_v40, %v1090_v57  ;;  %v1159_v52 = vadd.f32 %v3055_v40, %v1085_v46  ;;  %v1240_v60 = vadd.f32 %v3057_v7, %v1180_v1  ;;  %v1168_v21 = vadd.f32 %v3055_v40, %v1130_v54 }
 0x26e   :  { %v1249_v35 = vadd.f32 %v3057_v7, %v1216_v33  ;;  %v1169_v9 = vadd.f32 %v3055_v40, %v1135_v12  ;;  %v1250_v36 = vadd.f32 %v3057_v7, %v1220_v38  ;;  %v1241_v37 = vadd.f32 %v3057_v7, %v1184_v14 }
 0x26f   :  { %v1256_v48 = vmul.f32 %v1159_v52, %v1159_v52  ;;  %v1272_v59 = vmul.f32 %v1240_v60, %v1240_v60  ;;  %v1265_v50 = vmul.f32 %v1168_v21, %v1168_v21  ;;  %v1257_v6 = vmul.f32 %v1160_v25, %v1160_v25 }
 0x270   :  { %v3064_v24 = vpop.permute.xlu2 %1139  ;;  %v1281_v56 = vmul.f32 %v1249_v35, %v1249_v35  ;;  %v1266_v28 = vmul.f32 %v1169_v9, %v1169_v9  ;;  %v1282_v15 = vmul.f32 %v1250_v36, %v1250_v36  ;;  %v1273_v42 = vmul.f32 %v1241_v37, %v1241_v37 }
 0x271   :  { %v3068_v4 = vadd.f32 %v1272_v59, %v1256_v48 }
 0x272   :  { %v1095_v44 = vpop.permute.xlu1 %1094  ;;  %v3070_v2 = vadd.f32 %v1281_v56, %v1265_v50  ;;  %v3073_v32 = vadd.f32 %v1282_v15, %v1266_v28  ;;  %v3075_v19 = vadd.f32 %v1273_v42, %v1257_v6 }
 0x273   :  { %v1161_v39 = vadd.f32 %v3055_v40, %v1095_v44 }
 0x275   :  { %v1258_v46 = vmul.f32 %v1161_v39, %v1161_v39 }
 0x278   :  { %v1145_v18 = vpop.permute.xlu2 %1144 }
 0x279   :  { %v1232_v33 = vpop.permute.xlu0 %1231  ;;  %v1171_v38 = vadd.f32 %v3055_v40, %v1145_v18 }
 0x27a   :  { %v1253_v57 = vadd.f32 %v3057_v7, %v1232_v33 }
 0x27b   :  { %v1188_v47 = vpop.permute.xlu1 %1187  ;;  %v1268_v52 = vmul.f32 %v1171_v38, %v1171_v38 }
 0x27c   :  { %v1242_v54 = vadd.f32 %v3057_v7, %v1188_v47  ;;  %v1285_v35 = vmul.f32 %v1253_v57, %v1253_v57  ;;  %v1158_v57 = vadd.f32 %v3055_v40, %v1080_v55 }
 0x27e   :  { %v1274_v1 = vmul.f32 %v1242_v54, %v1242_v54 }
 0x280   :  { %v3081_v12 = vadd.f32 %v1274_v1, %v1258_v46 }
 0x281   :  { %v1228_v14 = vpop.permute.xlu2 %1227 }
 0x282   :  { %v1252_v23 = vadd.f32 %v3057_v7, %v1228_v14 }
 0x284   :  { %v1150_v25 = vpop.permute.xlu1 %1149  ;;  %v1284_v60 = vmul.f32 %v1252_v23, %v1252_v23  ;;  %v1239_v23 = vadd.f32 %v3057_v7, %v3040_v30 }
 0x285   :  { %v1172_v21 = vadd.f32 %v3055_v40, %v1150_v25 }
 0x286   :  { %v3087_v59 = vadd.f32 %v1284_v60, %v1268_v52 }
 0x287   :  { %v1269_v48 = vmul.f32 %v1172_v21, %v1172_v21 }
 0x289   :  { %v3089_v50 = vadd.f32 %v1285_v35, %v1269_v48  ;;  %v1255_v48 = vmul.f32 %v1158_v57, %v1158_v57 }
 0x28a   :  { %v1155_v56 = vpop.permute.xlu2 %1154 }
 0x28b   :  { %v1115_v28 = vpop.permute.xlu0 %1114  ;;  %v1173_v47 = vadd.f32 %v3055_v40, %v1155_v56  ;;  %v1271_v56 = vmul.f32 %v1239_v23, %v1239_v23 }
 0x28c   :  { %v1105_v44 = vpop.permute.xlu1 %1104  ;;  %v1165_v39 = vadd.f32 %v3055_v40, %v1115_v28 }
 0x28d   :  { %v1163_v36 = vadd.f32 %v3055_v40, %v1105_v44  ;;  %v1270_v25 = vmul.f32 %v1173_v47, %v1173_v47 }
 0x28e   :  { %v1262_v38 = vmul.f32 %v1165_v39, %v1165_v39 }
 0x28f   :  { %v1260_v15 = vmul.f32 %v1163_v36, %v1163_v36 }
 0x292   :  { %v1110_v9 = vpop.permute.xlu2 %1109 }
 0x293   :  { %v1164_v44 = vadd.f32 %v3055_v40, %v1110_v9 }
 0x295   :  { %v1196_v6 = vpop.permute.xlu1 %1195  ;;  %v1261_v30 = vmul.f32 %v1164_v44, %v1164_v44 }
 0x296   :  { %v1244_v37 = vadd.f32 %v3057_v7, %v1196_v6  ;;  %v3110_v6 = vadd.f32 %v1271_v56, %v1255_v48  ;;  %v1251_v56 = vadd.f32 %v3057_v7, %v3077_v63  ;;  %v1336_v63 = vsel %vm1305_vm8, %v3070_v2, -inf }
 0x298   :  { %v1276_v42 = vmul.f32 %v1244_v37, %v1244_v37 }
 0x29a   :  { %v3093_v18 = vadd.f32 %v1276_v42, %v1260_v15  ;;  %v1306_v42 = vsel %vm1305_vm8, %v3110_v6, -inf }
 0x29b   :  { %v1204_v54 = vpop.permute.xlu2 %1203 }
 0x29c   :  { %v1246_v46 = vadd.f32 %v3057_v7, %v1204_v54 }
 0x29d   :  { %v1236_v1 = vpop.permute.xlu1 %1235 }
 0x29e   :  { %v1254_v33 = vadd.f32 %v3057_v7, %v1236_v1  ;;  %v1278_v14 = vmul.f32 %v1246_v46, %v1246_v46 }
 0x2a0   :  { %v1286_v52 = vmul.f32 %v1254_v33, %v1254_v33  ;;  %v3102_v60 = vadd.f32 %v1278_v14, %v1262_v38  ;;  %v1212_v33 = vpop.permute.xlu0 %1211 }
 0x2a1   :  { %v1248_v14 = vadd.f32 %v3057_v7, %v1212_v33 }
 0x2a2   :  { %v3104_v21 = vadd.f32 %v1286_v52, %v1270_v25  ;;  %v1327_v35 = vsel %vm1305_vm8, %v3102_v60, -inf  ;;  %v1170_v52 = vadd.f32 %v3055_v40, %v3064_v24  ;;  %v1309_v24 = vsel %vm1305_vm8, %v3068_v4, -inf }
 0x2a3   :  { %1328 = vmax.xlane.f32.xlu0 %v1327_v35  ;;  %v1208_v28 = vpop.permute.xlu2 %1207  ;;  %v1280_v35 = vmul.f32 %v1248_v14, %v1248_v14 }
 0x2a4   :  { %v1247_v47 = vadd.f32 %v3057_v7, %v1208_v28 }
 0x2a5   :  { %v1200_v36 = vpop.permute.xlu1 %1199 }
 0x2a6   :  { %v1245_v55 = vadd.f32 %v3057_v7, %v1200_v36  ;;  %v1279_v46 = vmul.f32 %v1247_v47, %v1247_v47  ;;  %v1267_v36 = vmul.f32 %v1170_v52, %v1170_v52  ;;  %v1312_v47 = vsel %vm1305_vm8, %v3075_v19, -inf }
 0x2a8   :  { %v1277_v37 = vmul.f32 %v1245_v55, %v1245_v55 }
 0x2aa   :  { %v1293_v15 = vadd.f32 %v1277_v37, %v1261_v30  ;;  %v1283_v30 = vmul.f32 %v1251_v56, %v1251_v56 }
 0x2ab   :  { %1307 = vmax.xlane.f32.xlu0 %v1306_v42  ;;  %v1339_v42 = vsel %vm1305_vm8, %v3073_v32, -inf }
 0x2ac   :  { %v1324_v39 = vsel %vm1305_vm8, %v1293_v15, -inf  ;;  %v3125_v37 = vadd.f32 %v1283_v30, %v1267_v36 }
 0x2ad   :  { %1325 = vmax.xlane.f32.xlu1 %v1324_v39  ;;  %v1345_v39 = vsel %vm1305_vm8, %v3087_v59, -inf }
 0x2ae   :  { %v1120_v9 = vpop.permute.xlu1 %1119  ;;  %v1342_v28 = vsel %vm1305_vm8, %v3125_v37, -inf }
 0x2af   :  { %v1166_v54 = vadd.f32 %v3055_v40, %v1120_v9  ;;  %v1315_v9 = vsel %vm1305_vm8, %v3081_v12, -inf }
 0x2b1   :  { %v1263_v1 = vmul.f32 %v1166_v54, %v1166_v54  ;;  %v1321_v54 = vsel %vm1305_vm8, %v3093_v18, -inf }
 0x2b3   :  { %v1295_v38 = vadd.f32 %v1279_v46, %v1263_v1  ;;  %v1351_v46 = vsel %vm1305_vm8, %v3104_v21, -inf  ;;  %v1303_v1 = vlaneseq }
 0x2b5   :  { %v1330_v57 = vsel %vm1305_vm8, %v1295_v38, -inf  ;;  %v3149_v14 = vand.u32 127, %v1303_v1 }
 0x2b6   :  { %1331 = vmax.xlane.f32.xlu2 %v1330_v57  ;;  %v1125_v23 = vpop.permute.xlu1 %1124 }
 0x2b7   :  { %v1167_v25 = vadd.f32 %v3055_v40, %v1125_v23 }
 0x2b9   :  { %v1264_v48 = vmul.f32 %v1167_v25, %v1167_v25 }
 0x2bb   :  { %v1296_v44 = vadd.f32 %v1280_v35, %v1264_v48 }
 0x2bd   :  { %v1333_v55 = vsel %vm1305_vm8, %v1296_v44, -inf }
 0x2be   :  { %1334 = vmax.xlane.f32.xlu0 %v1333_v55 }
 0x2c6   :  { %1099 = vperm.xlu1 %1916, %v3015_v13   ;;  %1343 = vmax.xlane.f32.xlu0 %v1342_v28 }
 0x2ce   :  { %1191 = vperm.xlu2 %1915, %v3015_v13   ;;  %1310 = vmax.xlane.f32.xlu0 %v1309_v24  ;;  %v1348_v13 = vsel %vm1305_vm8, %v3089_v50, -inf }
 0x2f0   :  { %1337 = vmax.xlane.f32.xlu1 %v1336_v63 }
 0x2f7   :  { %1340 = vmax.xlane.f32.xlu2 %v1339_v42 }
 0x2f8   :  { %1346 = vmax.xlane.f32.xlu1 %v1345_v39 }
 0x2ff   :  { %1313 = vmax.xlane.f32.xlu2 %v1312_v47 }
 0x300   :  { %1349 = vmax.xlane.f32.xlu1 %v1348_v13 }
 0x307   :  { %1316 = vmax.xlane.f32.xlu2 %v1315_v9 }
 0x308   :  { %1322 = vmax.xlane.f32.xlu1 %v1321_v54 }
 0x30f   :  { %1352 = vmax.xlane.f32.xlu2 %v1351_v46 }
 0x316   :  { %v1329_v33 = vpop.xlane.xlu0 %1328 }
 0x317   :  { %vm1361_vm9 = vcmp.eq.f32.partialorder %v3102_v60, %v1329_v33 }
 0x318   :  { %v1377_v52 = vsel %vm1361_vm9, %v3149_v14, 4 }
 0x319   :  { %v3161_v56 = vsel %vm1305_vm8, %v1377_v52, 2147483647 }
 0x31a   :  { %v1493_v60 = vshra.s32 %v3161_v56, 16 }
 0x31c   :  { %v3166_v30 = vcvt.s32.f32 %v1493_v60 }
 0x31e   :  { %v1308_v36 = vpop.xlane.xlu0 %1307 }
 0x31f   :  { %vm1354_vm13 = vcmp.eq.f32.partialorder %v3110_v6, %v1308_v36 }
 0x320   :  { %v1326_v57 = vpop.xlane.xlu1 %1325 }
 0x321   :  { %vm1360_vm10 = vcmp.eq.f32.partialorder %v1293_v15, %v1326_v57 }
 0x322   :  { %v1376_v23 = vsel %vm1360_vm10, %v3149_v14, 4 }
 0x323   :  { %v3154_v25 = vsel %vm1305_vm8, %v1376_v23, 2147483647 }
 0x324   :  { %v1478_v35 = vshra.s32 %v3154_v25, 16 }
 0x326   :  { %v3158_v48 = vcvt.s32.f32 %v1478_v35 }
 0x328   :  { %1481 = vmin.xlane.f32.xlu0 %v3158_v48 }
 0x329   :  { %v1332_v55 = vpop.xlane.xlu2 %1331 }
 0x32a   :  { %vm1362_vm11 = vcmp.eq.f32.partialorder %v1295_v38, %v1332_v55  ;;  %v1370_v55 = vsel %vm1354_vm13, %v3149_v14, 4 }
 0x32b   :  { %v1378_v15 = vsel %vm1362_vm11, %v3149_v14, 4 }
 0x32c   :  { %v3169_v28 = vsel %vm1305_vm8, %v1378_v15, 2147483647 }
 0x32d   :  { %v1508_v63 = vshra.s32 %v3169_v28, 16 }
 0x32f   :  { %v3174_v39 = vcvt.s32.f32 %v1508_v63  ;;  %v3201_v63 = vsel %vm1305_vm8, %v1370_v55, 2147483647 }
 0x330   :  { %1496 = vmin.xlane.f32.xlu0 %v3166_v30 }
 0x331   :  { %v1335_v24 = vpop.xlane.xlu0 %1334  ;;  %v1192_v13 = vpop.permute.xlu2 %1191 }
 0x332   :  { %vm1363_vm12 = vcmp.eq.f32.partialorder %v1296_v44, %v1335_v24  ;;  %v1243_v46 = vadd.f32 %v3057_v7, %v1192_v13 }
 0x333   :  { %v1379_v42 = vsel %vm1363_vm12, %v3149_v14, 4 }
 0x334   :  { %v3177_v38 = vsel %vm1305_vm8, %v1379_v42, 2147483647  ;;  %v1275_v33 = vmul.f32 %v1243_v46, %v1243_v46 }
 0x335   :  { %v1523_v9 = vshra.s32 %v3177_v38, 16 }
 0x337   :  { %v3183_v44 = vcvt.s32.f32 %v1523_v9 }
 0x338   :  { %v1100_v47 = vpop.permute.xlu1 %1099  ;;  %1511 = vmin.xlane.f32.xlu0 %v3174_v39 }
 0x339   :  { %v1162_v54 = vadd.f32 %v3055_v40, %v1100_v47  ;;  %v1344_v52 = vpop.xlane.xlu0 %1343  ;;  %v1388_v47 = vshra.s32 %v3201_v63, 16 }
 0x33a   :  { %vm1366_vm15 = vcmp.eq.f32.partialorder %v3125_v37, %v1344_v52 }
 0x33b   :  { %v1259_v1 = vmul.f32 %v1162_v54, %v1162_v54  ;;  %v1382_v13 = vsel %vm1366_vm15, %v3149_v14, 4 }
 0x33d   :  { %v3186_v57 = vadd.f32 %v1275_v33, %v1259_v1 }
 0x33f   :  { %v1318_v23 = vsel %vm1305_vm8, %v3186_v57, -inf }
 0x340   :  { %1526 = vmin.xlane.f32.xlu0 %v3183_v44 }
 0x341   :  { %v1311_v15 = vpop.xlane.xlu0 %1310 }
 0x342   :  { %vm1355_vm4 = vcmp.eq.f32.partialorder %v3068_v4, %v1311_v15  ;;  %v3220_v4 = vcvt.s32.f32 %v1388_v47 }
 0x343   :  { %v1371_v37 = vsel %vm1355_vm4, %v3149_v14, 4 }
 0x344   :  { %v3223_v46 = vsel %vm1305_vm8, %v1371_v37, 2147483647 }
 0x348   :  { %1319 = vmax.xlane.f32.xlu0 %v1318_v23  ;;  %v1403_v23 = vshra.s32 %v3223_v46, 16 }
 0x34a   :  { %v3238_v15 = vcvt.s32.f32 %v1403_v23 }
 0x363   :  { %v1338_v35 = vpop.xlane.xlu1 %1337 }
 0x364   :  { %vm1364_vm14 = vcmp.eq.f32.partialorder %v3070_v2, %v1338_v35 }
 0x365   :  { %v1380_v40 = vsel %vm1364_vm14, %v3149_v14, 4 }
 0x366   :  { %v3194_v7 = vsel %vm1305_vm8, %v1380_v40, 2147483647 }
 0x367   :  { %v1538_v60 = vshra.s32 %v3194_v7, 16 }
 0x369   :  { %v3198_v24 = vcvt.s32.f32 %v1538_v60 }
 0x36a   :  { %v1341_v42 = vpop.xlane.xlu2 %1340 }
 0x36b   :  { %vm1365_vm3 = vcmp.eq.f32.partialorder %v3073_v32, %v1341_v42  ;;  %1541 = vmin.xlane.f32.xlu1 %v3198_v24  ;;  %v1347_v6 = vpop.xlane.xlu1 %1346  ;;  %v3218_v32 = vsel %vm1305_vm8, %v1382_v13, 2147483647 }
 0x36c   :  { %v1381_v2 = vsel %vm1365_vm3, %v3149_v14, 4  ;;  %vm1367_vm5 = vcmp.eq.f32.partialorder %v3087_v59, %v1347_v6  ;;  %v1568_v33 = vshra.s32 %v3218_v32, 16 }
 0x36d   :  { %v3209_v36 = vsel %vm1305_vm8, %v1381_v2, 2147483647  ;;  %v1383_v52 = vsel %vm1367_vm5, %v3149_v14, 4 }
 0x36e   :  { %v1553_v9 = vshra.s32 %v3209_v36, 16  ;;  %v3233_v55 = vcvt.s32.f32 %v1568_v33  ;;  %v3236_v60 = vsel %vm1305_vm8, %v1383_v52, 2147483647 }
 0x36f   :  { %v1583_v42 = vshra.s32 %v3236_v60, 16 }
 0x370   :  { %v3215_v54 = vcvt.s32.f32 %v1553_v9 }
 0x371   :  { %v3251_v9 = vcvt.s32.f32 %v1583_v42  ;;  %v1477_v42 = vand.u32 65535, %v3154_v25  ;;  %v1507_v25 = vand.u32 65535, %v3169_v28 }
 0x372   :  { %1556 = vmin.xlane.f32.xlu2 %v3215_v54  ;;  %v1314_v1 = vpop.xlane.xlu2 %1313 }
 0x373   :  { %1391 = vmin.xlane.f32.xlu1 %v3220_v4  ;;  %vm1356_vm6 = vcmp.eq.f32.partialorder %v3075_v19, %v1314_v1  ;;  %v1350_v35 = vpop.xlane.xlu1 %1349 }
 0x374   :  { %v1372_v40 = vsel %vm1356_vm6, %v3149_v14, 4  ;;  %vm1368_vm7 = vcmp.eq.f32.partialorder %v3089_v50, %v1350_v35 }
 0x375   :  { %v3241_v59 = vsel %vm1305_vm8, %v1372_v40, 2147483647  ;;  %v1384_v6 = vsel %vm1368_vm7, %v3149_v14, 4 }
 0x376   :  { %v1418_v2 = vshra.s32 %v3241_v59, 16  ;;  %v3254_v37 = vsel %vm1305_vm8, %v1384_v6, 2147483647  ;;  %v1479_v6 = vcvt.s32.f32 %v1477_v42  ;;  %v1509_v42 = vcvt.s32.f32 %v1507_v25 }
 0x377   :  { %v1537_v25 = vand.u32 65535, %v3194_v7 }
 0x378   :  { %v3256_v1 = vcvt.s32.f32 %v1418_v2 }
 0x37a   :  { %v1317_v19 = vpop.xlane.xlu2 %1316  ;;  %1571 = vmin.xlane.f32.xlu2 %v3233_v55 }
 0x37b   :  { %1406 = vmin.xlane.f32.xlu1 %v3238_v15  ;;  %vm1357_vm9 = vcmp.eq.f32.partialorder %v3081_v12, %v1317_v19  ;;  %v1323_v13 = vpop.xlane.xlu1 %1322  ;;  %v1598_v12 = vshra.s32 %v3254_v37, 16 }
 0x37c   :  { %v1373_v47 = vsel %vm1357_vm9, %v3149_v14, 4  ;;  %vm1359_vm10 = vcmp.eq.f32.partialorder %v3093_v18, %v1323_v13  ;;  %v1492_v13 = vand.u32 65535, %v3161_v56  ;;  %v1522_v56 = vand.u32 65535, %v3177_v38 }
 0x37d   :  { %v3259_v50 = vsel %vm1305_vm8, %v1373_v47, 2147483647  ;;  %v1375_v23 = vsel %vm1359_vm10, %v3149_v14, 4  ;;  %v3267_v52 = vcvt.s32.f32 %v1598_v12 }
 0x37e   :  { %v1433_v33 = vshra.s32 %v3259_v50, 16  ;;  %v3270_v35 = vsel %vm1305_vm8, %v1375_v23, 2147483647 }
 0x37f   :  { %v1463_v18 = vshra.s32 %v3270_v35, 16 }
 0x380   :  { %v3272_v40 = vcvt.s32.f32 %v1433_v33  ;;  %v1494_v33 = vcvt.s32.f32 %v1492_v13 }
 0x381   :  { %v3277_v19 = vcvt.s32.f32 %v1463_v18 }
 0x382   :  { %1586 = vmin.xlane.f32.xlu2 %v3251_v9  ;;  %v1353_v5 = vpop.xlane.xlu2 %1352 }
 0x383   :  { %1421 = vmin.xlane.f32.xlu1 %v3256_v1  ;;  %vm1369_vm14 = vcmp.eq.f32.partialorder %v3104_v21, %v1353_v5 }
 0x38a   :  { %1601 = vmin.xlane.f32.xlu2 %v3267_v52 }
 0x38b   :  { %1436 = vmin.xlane.f32.xlu1 %v3272_v40 }
 0x392   :  { %1466 = vmin.xlane.f32.xlu2 %v3277_v19 }
 0x39b   :  { %v3281_v2 = vpop.xlane.xlu0 %1481 }
 0x39c   :  { %vm1483_vm11 = vcmp.eq.f32.partialorder %v3158_v48, %v3281_v2 }
 0x39d   :  { %v1484_v47 = vsel %vm1483_vm11, %v1479_v6, inf  ;;  %v1385_v6 = vsel %vm1369_vm14, %v3149_v14, 4 }
 0x39e   :  { %1485 = vmin.xlane.f32.xlu0 %v1484_v47  ;;  %v1524_v47 = vcvt.s32.f32 %v1522_v56  ;;  %v3303_v28 = vsel %vm1305_vm8, %v1385_v6, 2147483647  ;;  %v1552_v56 = vand.u32 65535, %v3209_v36  ;;  %v1387_v6 = vand.u32 65535, %v3201_v63 }
 0x39f   :  { %v1567_v36 = vand.u32 65535, %v3218_v32  ;;  %v1402_v63 = vand.u32 65535, %v3223_v46  ;;  %v1582_v32 = vand.u32 65535, %v3236_v60  ;;  %v1417_v46 = vand.u32 65535, %v3241_v59 }
 0x3a0   :  { %v1389_v7 = vcvt.s32.f32 %v1387_v6 }
 0x3a1   :  { %v1584_v6 = vcvt.s32.f32 %v1582_v32 }
 0x3a3   :  { %v3286_v12 = vpop.xlane.xlu0 %1496 }
 0x3a4   :  { %vm1498_vm12 = vcmp.eq.f32.partialorder %v3166_v30, %v3286_v12 }
 0x3a5   :  { %v1499_v23 = vsel %vm1498_vm12, %v1494_v33, inf }
 0x3a6   :  { %1500 = vmin.xlane.f32.xlu0 %v1499_v23 }
 0x3ab   :  { %v3291_v18 = vpop.xlane.xlu0 %1511 }
 0x3ac   :  { %vm1513_vm13 = vcmp.eq.f32.partialorder %v3174_v39, %v3291_v18  ;;  %v1613_v39 = vshra.s32 %v3303_v28, 16 }
 0x3ad   :  { %v1514_v48 = vsel %vm1513_vm13, %v1509_v42, inf }
 0x3ae   :  { %1515 = vmin.xlane.f32.xlu0 %v1514_v48  ;;  %v3307_v5 = vcvt.s32.f32 %v1613_v39 }
 0x3b3   :  { %v3298_v30 = vpop.xlane.xlu0 %1526 }
 0x3b4   :  { %vm1528_vm15 = vcmp.eq.f32.partialorder %v3183_v44, %v3298_v30 }
 0x3b5   :  { %v1529_v13 = vsel %vm1528_vm15, %v1524_v47, inf }
 0x3b6   :  { %1530 = vmin.xlane.f32.xlu0 %v1529_v13  ;;  %v1554_v13 = vcvt.s32.f32 %v1552_v56 }
 0x3bb   :  { %v1320_v33 = vpop.xlane.xlu0 %1319 }
 0x3bc   :  { %vm1358_vm3 = vcmp.eq.f32.partialorder %v3186_v57, %v1320_v33  ;;  %v1539_v57 = vcvt.s32.f32 %v1537_v25 }
 0x3bd   :  { %v1374_v21 = vsel %vm1358_vm3, %v3149_v14, 4 }
 0x3be   :  { %v3311_v38 = vsel %vm1305_vm8, %v1374_v21, 2147483647  ;;  %1616 = vmin.xlane.f32.xlu0 %v3307_v5 }
 0x3bf   :  { %v1448_v44 = vshra.s32 %v3311_v38, 16 }
 0x3c1   :  { %v3315_v23 = vcvt.s32.f32 %v1448_v44  ;;  %v1569_v44 = vcvt.s32.f32 %v1567_v36 }
 0x3c3   :  { %1451 = vmin.xlane.f32.xlu2 %v3315_v23 }
 0x3de   :  { %v3319_v42 = vpop.xlane.xlu1 %1541 }
 0x3df   :  { %vm1543_vm4 = vcmp.eq.f32.partialorder %v3198_v24, %v3319_v42 }
 0x3e0   :  { %v1544_v48 = vsel %vm1543_vm4, %v1539_v57, inf }
 0x3e1   :  { %1545 = vmin.xlane.f32.xlu1 %v1544_v48  ;;  %v1690_v48 = vld [vmem:[%s3677_s3] sm:$0xf] }
 0x3e2   :  { %1893 = vmatpush.msk.msra.mxu3 %vm872_vm0, %v1690_v48  ;;  %1874 = vmatpush.msk.msrb.mxu0 %vm872_vm0, %v1690_v48 }
 0x3e3   :  { %1892 = vmatpush.msk.msra.mxu2 %vm872_vm0, %v1690_v48  ;;  %v2004_v48 = vmov 0.0  }
 0x3e5   :  { %v3325_v47 = vpop.xlane.xlu2 %1556 }
 0x3e6   :  { %v3327_v39 = vpop.xlane.xlu1 %1391  ;;  %vm1558_vm5 = vcmp.eq.f32.partialorder %v3215_v54, %v3325_v47  ;;  %v1404_v54 = vcvt.s32.f32 %v1402_v63 }
 0x3e7   :  { %v1559_v33 = vsel %vm1558_vm5, %v1554_v13, inf  ;;  %vm1393_vm6 = vcmp.eq.f32.partialorder %v3220_v4, %v3327_v39  ;;  %v1597_v13 = vand.u32 65535, %v3254_v37  ;;  %v1462_v37 = vand.u32 65535, %v3270_v35 }
 0x3e8   :  { %1560 = vmin.xlane.f32.xlu0 %v1559_v33  ;;  %v1394_v24 = vsel %vm1393_vm6, %v1389_v7, inf  ;;  %v1432_v7 = vand.u32 65535, %v3259_v50 }
 0x3e9   :  { %1395 = vmin.xlane.f32.xlu1 %v1394_v24  ;;  %v1599_v24 = vcvt.s32.f32 %v1597_v13  ;;  %v1464_v50 = vcvt.s32.f32 %v1462_v37 }
 0x3ed   :  { %v3335_v21 = vpop.xlane.xlu2 %1571 }
 0x3ee   :  { %v3337_v25 = vpop.xlane.xlu1 %1406  ;;  %vm1573_vm7 = vcmp.eq.f32.partialorder %v3233_v55, %v3335_v21 }
 0x3ef   :  { %v1574_v57 = vsel %vm1573_vm7, %v1569_v44, inf  ;;  %vm1408_vm9 = vcmp.eq.f32.partialorder %v3238_v15, %v3337_v25  ;;  %v1419_v15 = vcvt.s32.f32 %v1417_v46 }
 0x3f0   :  { %1575 = vmin.xlane.f32.xlu2 %v1574_v57  ;;  %v1409_v4 = vsel %vm1408_vm9, %v1404_v54, inf }
 0x3f1   :  { %1410 = vmin.xlane.f32.xlu0 %v1409_v4 }
 0x3f5   :  { %v3348_v56 = vpop.xlane.xlu2 %1586 }
 0x3f6   :  { %v3352_v55 = vpop.xlane.xlu1 %1421  ;;  %vm1588_vm10 = vcmp.eq.f32.partialorder %v3251_v9, %v3348_v56  ;;  %v1434_v9 = vcvt.s32.f32 %v1432_v7 }
 0x3f7   :  { %v1589_v60 = vsel %vm1588_vm10, %v1584_v6, inf  ;;  %vm1423_vm11 = vcmp.eq.f32.partialorder %v3256_v1, %v3352_v55 }
 0x3f8   :  { %1590 = vmin.xlane.f32.xlu1 %v1589_v60  ;;  %v1424_v59 = vsel %vm1423_vm11, %v1419_v15, inf  ;;  %v1518_v60 = vcvt.f32.s32 %v3291_v18  ;;  %v1533_v18 = vcvt.f32.s32 %v3298_v30  ;;  %v1612_v30 = vand.u32 65535, %v3303_v28 }
 0x3f9   :  { %1425 = vmin.xlane.f32.xlu2 %v1424_v59  ;;  %v1447_v28 = vand.u32 65535, %v3311_v38 }
 0x3fa   :  { %v1519_v13 = vshll.u32 %v1518_v60, 16 }
 0x3fd   :  { %v3361_v33 = vpop.xlane.xlu2 %1601 }
 0x3fe   :  { %v3363_v36 = vpop.xlane.xlu1 %1436  ;;  %vm1603_vm12 = vcmp.eq.f32.partialorder %v3267_v52, %v3361_v33  ;;  %v1488_v52 = vcvt.f32.s32 %v3281_v2 }
 0x3ff   :  { %v1604_v63 = vsel %vm1603_vm12, %v1599_v24, inf  ;;  %vm1438_vm0 = vcmp.eq.f32.partialorder %v3272_v40, %v3363_v36  ;;  %v1503_v40 = vcvt.f32.s32 %v3286_v12 }
 0x400   :  { %1605 = vmin.xlane.f32.xlu0 %v1604_v63  ;;  %v1439_v1 = vsel %vm1438_vm0, %v1434_v9, inf  ;;  %v1489_v4 = vshll.u32 %v1488_v52, 16  ;;  %v1534_v63 = vshll.u32 %v1533_v18, 16 }
 0x401   :  { %1440 = vmin.xlane.f32.xlu1 %v1439_v1  ;;  %v1504_v2 = vshll.u32 %v1503_v40, 16  ;;  %v1563_v40 = vcvt.f32.s32 %v3325_v47 }
 0x405   :  { %v3370_v44 = vpop.xlane.xlu2 %1466 }
 0x406   :  { %vm1468_vm13 = vcmp.eq.f32.partialorder %v3277_v19, %v3370_v44 }
 0x407   :  { %v1469_v54 = vsel %vm1468_vm13, %v1464_v50, inf }
 0x408   :  { %1470 = vmin.xlane.f32.xlu2 %v1469_v54  ;;  %v1614_v54 = vcvt.s32.f32 %v1612_v30 }
 0x411   :  { %v1486_v57 = vpop.xlane.xlu0 %1485 }
 0x412   :  { %v1487_v32 = vcvt.f32.s32 %v1486_v57 }
 0x414   :  { %v1490_v46 = vadd.s32 %v1489_v4, %v1487_v32 }
 0x416   :  { %vm1632_vm14 = vcmp.eq.s32.totalorder %v3149_v14, %v1490_v46 }
 0x417   :  { %v1864_v35 = vsel %vm1632_vm14, 1.0, %v2004_v48 }
 0x418   :  { %1680 = vst.msk [vmem:[%s3678_s6 + $0x30] sm:$0xff] %vm1305_vm8, %v1864_v35  ;;  %1881 = vmatmul.msk.f32.vlgmr.msra.gmra.mxu3 %vm1305_vm8, %v1864_v35 }
 0x419   :  { %v1501_v19 = vpop.xlane.xlu0 %1500 }
 0x41a   :  { %v1502_v6 = vcvt.f32.s32 %v1501_v19 }
 0x41c   :  { %v1505_v15 = vadd.s32 %v1504_v2, %v1502_v6  ;;  %v1578_v2 = vcvt.f32.s32 %v3335_v21 }
 0x41e   :  { %vm1633_vm15 = vcmp.eq.s32.totalorder %v3149_v14, %v1505_v15  ;;  %v1579_v21 = vshll.u32 %v1578_v2, 16 }
 0x41f   :  { %v1865_v12 = vsel %vm1633_vm15, 1.0, %v2004_v48 }
 0x420   :  { %782 = vrot.lane.b32.xlu2 %v2885_v17, %s2001_s12  ;;  %1681 = vst.msk [vmem:[%s3678_s6 + $0x38] sm:$0xff] %vm1305_vm8, %v1865_v12  ;;  %1882 = vmatmul.msk.f32.gmra.mxu3 %vm1305_vm8, %v1865_v12 }
 0x421   :  { %v1516_v59 = vpop.xlane.xlu0 %1515 }
 0x422   :  { %v1517_v7 = vcvt.f32.s32 %v1516_v59 }
 0x424   :  { %v1520_v24 = vadd.s32 %v1519_v13, %v1517_v7  ;;  %v1593_v7 = vcvt.f32.s32 %v3348_v56 }
 0x426   :  { %vm1634_vm3 = vcmp.eq.s32.totalorder %v3149_v14, %v1520_v24  ;;  %v1428_v24 = vcvt.f32.s32 %v3352_v55  ;;  %v1594_v56 = vshll.u32 %v1593_v7, 16 }
 0x427   :  { %v1866_v9 = vsel %vm1634_vm3, 1.0, %v2004_v48 }
 0x428   :  { %788 = vrot.lane.b32.xlu2 %v2827_v27, %s2001_s12  ;;  %1682 = vst.msk [vmem:[%s3678_s6 + $0x40] sm:$0xff] %vm1305_vm8, %v1866_v9  ;;  %1883 = vmatmul.msk.f32.gmra.mxu3 %vm1305_vm8, %v1866_v9 }
 0x429   :  { %v1531_v17 = vpop.xlane.xlu0 %1530 }
 0x42a   :  { %v1532_v1 = vcvt.f32.s32 %v1531_v17 }
 0x42c   :  { %v1535_v37 = vadd.s32 %v1534_v63, %v1532_v1  ;;  %v1429_v63 = vshll.u32 %v1428_v24, 16 }
 0x42e   :  { %vm1635_vm4 = vcmp.eq.s32.totalorder %v3149_v14, %v1535_v37 }
 0x42f   :  { %v1867_v50 = vsel %vm1635_vm4, 1.0, %v2004_v48 }
 0x430   :  { %794 = vrot.lane.b32.xlu2 %v2766_v51, %s2001_s12  ;;  %1683 = vst.msk [vmem:[%s3678_s6 + $0x48] sm:$0xff] %vm1305_vm8, %v1867_v50  ;;  %1884 = vmatmul.msk.f32.gmra.mxu3 %vm1305_vm8, %v1867_v50  ;;  %v1449_v51 = vcvt.s32.f32 %v1447_v28  ;;  %v1608_v50 = vcvt.f32.s32 %v3361_v33 }
 0x431   :  { %v3413_v27 = vpop.xlane.xlu0 %1616 }
 0x432   :  { %vm1618_vm5 = vcmp.eq.f32.partialorder %v3307_v5, %v3413_v27  ;;  %v1548_v5 = vcvt.f32.s32 %v3319_v42 }
 0x433   :  { %v1619_v52 = vsel %vm1618_vm5, %v1614_v54, inf  ;;  %v1443_v54 = vcvt.f32.s32 %v3363_v36  ;;  %v1609_v36 = vshll.u32 %v1608_v50, 16 }
 0x434   :  { %1620 = vmin.xlane.f32.xlu0 %v1619_v52  ;;  %v1549_v32 = vshll.u32 %v1548_v5, 16 }
 0x435   :  { %v1444_v5 = vshll.u32 %v1443_v54, 16 }
 0x436   :  { %v3418_v57 = vpop.xlane.xlu2 %1451 }
 0x437   :  { %vm1453_vm6 = vcmp.eq.f32.partialorder %v3315_v23, %v3418_v57 }
 0x438   :  { %800 = vrot.lane.b32.xlu2 %v2691_v26, %s2001_s12  ;;  %v1454_v4 = vsel %vm1453_vm6, %v1449_v51, inf  ;;  %v1398_v26 = vcvt.f32.s32 %v3327_v39 }
 0x439   :  { %1455 = vmin.xlane.f32.xlu1 %v1454_v4 }
 0x43a   :  { %v1399_v47 = vshll.u32 %v1398_v26, 16 }
 0x448   :  { %784 = vrot.lane.b32.xlu0 %v2833_v62, %s2001_s12 }
 0x450   :  { %790 = vrot.lane.b32.xlu0 %v2773_v10, %s2001_s12 }
 0x452   :  { %786 = vrot.lane.b32.xlu1 %v2865_v34, %s2001_s12  ;;  %v1564_v34 = vshll.u32 %v1563_v40, 16 }
 0x454   :  { %v1546_v38 = vpop.xlane.xlu1 %1545 }
 0x455   :  { %v1547_v46 = vcvt.f32.s32 %v1546_v38 }
 0x457   :  { %v1550_v23 = vadd.s32 %v1549_v32, %v1547_v46 }
 0x458   :  { %796 = vrot.lane.b32.xlu0 %v2697_v31, %s2001_s12 }
 0x459   :  { %vm1636_vm7 = vcmp.eq.s32.totalorder %v3149_v14, %v1550_v23  ;;  %v1473_v23 = vcvt.f32.s32 %v3370_v44 }
 0x45a   :  { %792 = vrot.lane.b32.xlu1 %v2802_v3, %s2001_s12  ;;  %v1868_v10 = vsel %vm1636_vm7, 1.0, %v2004_v48  ;;  %v1413_v3 = vcvt.f32.s32 %v3337_v25 }
 0x45b   :  { %1684 = vst.msk [vmem:[%s3678_s6 + $0x50] sm:$0xff] %vm1305_vm8, %v1868_v10  ;;  %1885 = vmatmul.msk.f32.gmra.mxu3 %vm1305_vm8, %v1868_v10  ;;  %v1561_v62 = vpop.xlane.xlu0 %1560  ;;  %v1474_v44 = vshll.u32 %v1473_v23, 16 }
 0x45c   :  { %v1562_v42 = vcvt.f32.s32 %v1561_v62  ;;  %v1396_v31 = vpop.xlane.xlu1 %1395  ;;  %v1414_v60 = vshll.u32 %v1413_v3, 16 }
 0x45d   :  { %v1397_v39 = vcvt.f32.s32 %v1396_v31 }
 0x45e   :  { %v1565_v35 = vadd.s32 %v1564_v34, %v1562_v42 }
 0x45f   :  { %v1400_v19 = vadd.s32 %v1399_v47, %v1397_v39 }
 0x460   :  { %802 = vrot.lane.b32.xlu0 %v2694_v20, %s2001_s12  ;;  %vm1637_vm9 = vcmp.eq.s32.totalorder %v3149_v14, %v1565_v35 }
 0x461   :  { %vm1626_vm10 = vcmp.eq.s32.totalorder %v3149_v14, %v1400_v19  ;;  %v1869_v6 = vsel %vm1637_vm9, 1.0, %v2004_v48 }
 0x462   :  { %798 = vrot.lane.b32.xlu1 %v2739_v43, %s2001_s12  ;;  %v1858_v15 = vsel %vm1626_vm10, 1.0, %v2004_v48  ;;  %1685 = vst.msk [vmem:[%s3678_s6 + $0x58] sm:$0xff] %vm1305_vm8, %v1869_v6 }
 0x463   :  { %1674 = vst.msk [vmem:[%s3678_s6] sm:$0xff] %vm1305_vm8, %v1858_v15  ;;  %1875 = vmatmul.msk.f32.vlgmr.msrb.gmra.mxu0 %vm1305_vm8, %v1858_v15  ;;  %v1576_v20 = vpop.xlane.xlu2 %1575  ;;  %1886 = vmatmul.msk.f32.gmra.mxu3 %vm1305_vm8, %v1869_v6 }
 0x464   :  { %v1577_v25 = vcvt.f32.s32 %v1576_v20  ;;  %v1411_v43 = vpop.xlane.xlu0 %1410 }
 0x465   :  { %v1412_v12 = vcvt.f32.s32 %v1411_v43 }
 0x466   :  { %v1580_v59 = vadd.s32 %v1579_v21, %v1577_v25  ;;  %v1458_v21 = vcvt.f32.s32 %v3418_v57 }
 0x467   :  { %v1415_v13 = vadd.s32 %v1414_v60, %v1412_v12 }
 0x468   :  { %vm1638_vm11 = vcmp.eq.s32.totalorder %v3149_v14, %v1580_v59 }
 0x469   :  { %vm1627_vm12 = vcmp.eq.s32.totalorder %v3149_v14, %v1415_v13  ;;  %v1870_v18 = vsel %vm1638_vm11, 1.0, %v2004_v48 }
 0x46a   :  { %804 = vrot.lane.b32.xlu1 %v2688_v41, %s2001_s12  ;;  %v1859_v9 = vsel %vm1627_vm12, 1.0, %v2004_v48  ;;  %1686 = vst.msk [vmem:[%s3678_s6 + $0x60] sm:$0xff] %vm1305_vm8, %v1870_v18 }
 0x46b   :  { %v1591_v17 = vpop.xlane.xlu1 %1590  ;;  %1675 = vst.msk [vmem:[%s3678_s6 + $0x8] sm:$0xff] %vm1305_vm8, %v1859_v9  ;;  %1876 = vmatmul.msk.f32.gmra.mxu0 %vm1305_vm8, %v1859_v9  ;;  %1887 = vmatmul.msk.f32.gmra.mxu3 %vm1305_vm8, %v1870_v18 }
 0x46c   :  { %v1592_v55 = vcvt.f32.s32 %v1591_v17  ;;  %v1426_v41 = vpop.xlane.xlu2 %1425 }
 0x46d   :  { %v1427_v1 = vcvt.f32.s32 %v1426_v41 }
 0x46e   :  { %v1595_v37 = vadd.s32 %v1594_v56, %v1592_v55 }
 0x46f   :  { %v1430_v30 = vadd.s32 %v1429_v63, %v1427_v1  ;;  %v3693_v1 = vld [vmem:[#allocation2_spill] sm:$0xff] }
 0x470   :  { %vm1639_vm0 = vcmp.eq.s32.totalorder %v3149_v14, %v1595_v37 }
 0x471   :  { %vm1628_vm13 = vcmp.eq.s32.totalorder %v3149_v14, %v1430_v30  ;;  %v1871_v28 = vsel %vm1639_vm0, 1.0, %v2004_v48 }
 0x472   :  { %v1860_v52 = vsel %vm1628_vm13, 1.0, %v2004_v48  ;;  %1687 = vst.msk [vmem:[%s3678_s6 + $0x68] sm:$0xff] %vm1305_vm8, %v1871_v28 }
 0x473   :  { %1676 = vst.msk [vmem:[%s3678_s6 + $0x10] sm:$0xff] %vm1305_vm8, %v1860_v52  ;;  %1877 = vmatmul.msk.f32.gmra.mxu0 %vm1305_vm8, %v1860_v52  ;;  %1888 = vmatmul.msk.f32.gmra.mxu3 %vm1305_vm8, %v1871_v28  ;;  %v1606_v33 = vpop.xlane.xlu0 %1605 }
 0x474   :  { %v1607_v51 = vcvt.f32.s32 %v1606_v33  ;;  %v1441_v4 = vpop.xlane.xlu1 %1440 }
 0x475   :  { %v1442_v38 = vcvt.f32.s32 %v1441_v4 }
 0x476   :  { %v1610_v32 = vadd.s32 %v1609_v36, %v1607_v51 }
 0x477   :  { %v1445_v46 = vadd.s32 %v1444_v5, %v1442_v38 }
 0x478   :  { %vm1640_vm14 = vcmp.eq.s32.totalorder %v3149_v14, %v1610_v32 }
 0x479   :  { %vm1629_vm15 = vcmp.eq.s32.totalorder %v3149_v14, %v1445_v46  ;;  %v1872_v40 = vsel %vm1640_vm14, 1.0, %v2004_v48 }
 0x47a   :  { %v1861_v26 = vsel %vm1629_vm15, 1.0, %v2004_v48  ;;  %1688 = vst.msk [vmem:[%s3678_s6 + $0x70] sm:$0xff] %vm1305_vm8, %v1872_v40 }
 0x47b   :  { %v1471_v10 = vpop.xlane.xlu2 %1470  ;;  %1677 = vst.msk [vmem:[%s3678_s6 + $0x18] sm:$0xff] %vm1305_vm8, %v1861_v26  ;;  %1878 = vmatmul.msk.f32.gmra.mxu0 %vm1305_vm8, %v1861_v26  ;;  %1889 = vmatmul.msk.f32.gmra.mxu3 %vm1305_vm8, %v1872_v40 }
 0x47c   :  { %v1472_v62 = vcvt.f32.s32 %v1471_v10 }
 0x47e   :  { %v1475_v34 = vadd.s32 %v1474_v44, %v1472_v62 }
 0x480   :  { %vm1631_vm3 = vcmp.eq.s32.totalorder %v3149_v14, %v1475_v34 }
 0x481   :  { %v1863_v42 = vsel %vm1631_vm3, 1.0, %v2004_v48 }
 0x482   :  { %1679 = vst.msk [vmem:[%s3678_s6 + $0x28] sm:$0xff] %vm1305_vm8, %v1863_v42  ;;  %1880 = vmatmul.msk.f32.vlgmr.msra.gmra.mxu2 %vm1305_vm8, %v1863_v42 }
 0x483   :  { %v783_v31 = vpop.permute.xlu2 %782 }
 0x484   :  { %v826_v47 = vsel %vm661_vm1, %v3017_v58, %v783_v31 }
 0x485   :  { %859 = vst.msk [vmem:[%s3676_s5 + $0x20] sm:$0xff] %vm838_vm2, %v826_v47 }
 0x48b   :  { %v789_v39 = vpop.permute.xlu2 %788 }
 0x48c   :  { %v829_v35 = vsel %vm661_vm1, %v3045_v49, %v789_v39  ;;  %v1623_v49 = vcvt.f32.s32 %v3413_v27  ;;  %v1459_v27 = vshll.u32 %v1458_v21, 16 }
 0x48d   :  { %862 = vst.msk [vmem:[%s3676_s5 + $0x38] sm:$0xff] %vm838_vm2, %v829_v35 }
 0x493   :  { %v795_v19 = vpop.permute.xlu2 %794 }
 0x494   :  { %v832_v2 = vsel %vm661_vm1, %v3029_v22, %v795_v19 }
 0x495   :  { %865 = vst.msk [vmem:[%s3676_s5 + $0x50] sm:$0xff] %vm838_vm2, %v832_v2 }
 0x49b   :  { %v801_v58 = vpop.permute.xlu2 %800  ;;  %v1777_v3 = vpop.f32.mrf.mxu3 }
 0x49c   :  { %v835_v6 = vsel %vm661_vm1, %v3034_v45, %v801_v58  ;;  %1813 = vst.msk [vmem:[%s3679_s7 + $0x30] sm:$0xff] %vm1305_vm8, %v1777_v3  ;;  %v1624_v45 = vshll.u32 %v1623_v49, 16 }
 0x49d   :  { %868 = vst.msk [vmem:[%s3676_s5 + $0x68] sm:$0xff] %vm838_vm2, %v835_v6 }
 0x4a3   :  { %v1780_v22 = vpop.f32.mrf.mxu3 }
 0x4a4   :  { %1814 = vst.msk [vmem:[%s3679_s7 + $0x38] sm:$0xff] %vm1305_vm8, %v1780_v22 }
 0x4a7   :  { %v1621_v15 = vpop.xlane.xlu0 %1620 }
 0x4a8   :  { %v1622_v20 = vcvt.f32.s32 %v1621_v15 }
 0x4aa   :  { %v1625_v25 = vadd.s32 %v1624_v45, %v1622_v20 }
 0x4ab   :  { %v1783_v43 = vpop.f32.mrf.mxu3 }
 0x4ac   :  { %1815 = vst.msk [vmem:[%s3679_s7 + $0x40] sm:$0xff] %vm1305_vm8, %v1783_v43  ;;  %v1456_v60 = vpop.xlane.xlu1 %1455  ;;  %vm1641_vm4 = vcmp.eq.s32.totalorder %v3149_v14, %v1625_v25 }
 0x4ad   :  { %v1457_v12 = vcvt.f32.s32 %v1456_v60  ;;  %v1873_v59 = vsel %vm1641_vm4, 1.0, %v2004_v48 }
 0x4ae   :  { %1689 = vst.msk [vmem:[%s3678_s6 + $0x78] sm:$0xff] %vm1305_vm8, %v1873_v59  ;;  %1890 = vmatmul.msk.f32.gmra.mxu3 %vm1305_vm8, %v1873_v59 }
 0x4af   :  { %v1460_v57 = vadd.s32 %v1459_v27, %v1457_v12 }
 0x4b1   :  { %vm1630_vm5 = vcmp.eq.s32.totalorder %v3149_v14, %v1460_v57 }
 0x4b2   :  { %v1862_v13 = vsel %vm1630_vm5, 1.0, %v2004_v48 }
 0x4b3   :  { %1678 = vst.msk [vmem:[%s3678_s6 + $0x20] sm:$0xff] %vm1305_vm8, %v1862_v13  ;;  %1879 = vmatmul.msk.f32.gmra.mxu0 %vm1305_vm8, %v1862_v13  ;;  %v1786_v7 = vpop.f32.mrf.mxu3 }
 0x4b4   :  { %1816 = vst.msk [vmem:[%s3679_s7 + $0x48] sm:$0xff] %vm1305_vm8, %v1786_v7 }
 0x4ba   :  { %v785_v24 = vpop.permute.xlu0 %784 }
 0x4bb   :  { %v827_v18 = vsel %vm661_vm1, %v3042_v61, %v785_v24 }
 0x4bc   :  { %860 = vst.msk [vmem:[%s3676_s5 + $0x28] sm:$0xff] %vm838_vm2, %v827_v18 }
 0x4c2   :  { %v791_v14 = vpop.permute.xlu0 %790 }
 0x4c3   :  { %v830_v48 = vsel %vm661_vm1, %v3026_v53, %v791_v14 }
 0x4c4   :  { %863 = vst.msk [vmem:[%s3676_s5 + $0x40] sm:$0xff] %vm838_vm2, %v830_v48  ;;  %v787_v9 = vpop.permute.xlu1 %786 }
 0x4c5   :  { %v828_v17 = vsel %vm661_vm1, %v3021_v0, %v787_v9 }
 0x4c6   :  { %861 = vst.msk [vmem:[%s3676_s5 + $0x30] sm:$0xff] %vm838_vm2, %v828_v17 }
 0x4ca   :  { %v797_v61 = vpop.permute.xlu0 %796 }
 0x4cb   :  { %v833_v56 = vsel %vm661_vm1, %v3047_v8, %v797_v61 }
 0x4cc   :  { %866 = vst.msk [vmem:[%s3676_s5 + $0x58] sm:$0xff] %vm838_vm2, %v833_v56  ;;  %v793_v53 = vpop.permute.xlu1 %792 }
 0x4cd   :  { %v831_v55 = vsel %vm661_vm1, %v3049_v11, %v793_v53 }
 0x4ce   :  { %864 = vst.msk [vmem:[%s3676_s5 + $0x48] sm:$0xff] %vm838_vm2, %v831_v55 }
 0x4d2   :  { %v803_v0 = vpop.permute.xlu0 %802 }
 0x4d3   :  { %v836_v41 = vsel %vm661_vm1, %v3053_v16, %v803_v0 }
 0x4d4   :  { %869 = vst.msk [vmem:[%s3676_s5 + $0x70] sm:$0xff] %vm838_vm2, %v836_v41  ;;  %v799_v8 = vpop.permute.xlu1 %798 }
 0x4d5   :  { %v834_v63 = vsel %vm661_vm1, %v3051_v29, %v799_v8 }
 0x4d6   :  { %867 = vst.msk [vmem:[%s3676_s5 + $0x60] sm:$0xff] %vm838_vm2, %v834_v63 }
 0x4dc   :  { %v805_v11 = vpop.permute.xlu1 %804 }
 0x4dd   :  { %v837_v37 = vsel %vm661_vm1, %v3693_v1, %v805_v11 }
 0x4de   :  { %870 = vst.msk [vmem:[%s3676_s5 + $0x78] sm:$0xff] %vm838_vm2, %v837_v37  ;;  %v1789_v16 = vpop.f32.mrf.mxu3 }
 0x4df   :  { %1817 = vst.msk [vmem:[%s3679_s7 + $0x50] sm:$0xff] %vm1305_vm8, %v1789_v16 }
 0x4e0   :  { %v1759_v29 = vpop.f32.mrf.mxu0 }
 0x4e1   :  { %1807 = vst.msk [vmem:[%s3679_s7] sm:$0xff] %vm1305_vm8, %v1759_v29 }
 0x4e6   :  { %v1792_v30 = vpop.f32.mrf.mxu3 }
 0x4e7   :  { %1818 = vst.msk [vmem:[%s3679_s7 + $0x58] sm:$0xff] %vm1305_vm8, %v1792_v30 }
 0x4e8   :  { %v1762_v50 = vpop.f32.mrf.mxu0 }
 0x4e9   :  { %1808 = vst.msk [vmem:[%s3679_s7 + $0x8] sm:$0xff] %vm1305_vm8, %v1762_v50 }
 0x4ee   :  { %v1795_v54 = vpop.f32.mrf.mxu3 }
 0x4ef   :  { %1819 = vst.msk [vmem:[%s3679_s7 + $0x60] sm:$0xff] %vm1305_vm8, %v1795_v54 }
 0x4f0   :  { %v1765_v28 = vpop.f32.mrf.mxu0 }
 0x4f1   :  { %1809 = vst.msk [vmem:[%s3679_s7 + $0x10] sm:$0xff] %vm1305_vm8, %v1765_v28 }
 0x4f6   :  { %v1798_v52 = vpop.f32.mrf.mxu3 }
 0x4f7   :  { %1820 = vst.msk [vmem:[%s3679_s7 + $0x68] sm:$0xff] %vm1305_vm8, %v1798_v52 }
 0x4f8   :  { %v1768_v33 = vpop.f32.mrf.mxu0 }
 0x4f9   :  { %1810 = vst.msk [vmem:[%s3679_s7 + $0x18] sm:$0xff] %vm1305_vm8, %v1768_v33 }
 0x4fe   :  { %v1801_v36 = vpop.f32.mrf.mxu3 }
 0x4ff   :  { %1821 = vst.msk [vmem:[%s3679_s7 + $0x70] sm:$0xff] %vm1305_vm8, %v1801_v36 }
 0x505   :  { %v1774_v51 = vpop.f32.mrf.mxu2 }
 0x506   :  { %1812 = vst.msk [vmem:[%s3679_s7 + $0x28] sm:$0xff] %vm1305_vm8, %v1774_v51 }
 0x530   :  { %v1771_v4 = vpop.f32.mrf.mxu0 }
 0x531   :  { %1811 = vst.msk [vmem:[%s3679_s7 + $0x20] sm:$0xff] %vm1305_vm8, %v1771_v4  ;;  %v1804_v5 = vpop.f32.mrf.mxu3 }
 0x532   :  { %1822 = vst.msk [vmem:[%s3679_s7 + $0x78] sm:$0xff] %vm1305_vm8, %v1804_v5 }

</bundles_post_ra>
